<compile_context>
chip_gen: v7x
topology: tpu7x:2x2x1
jax: 0.10.0
libtpu: 0.0.40
codegen_flags: <defaults>
</compile_context>

<pallas_src>
import functools

import jax
import jax.numpy as jnp
from jax.experimental import pallas as pl
from jax.experimental.pallas import tpu as pltpu

EPS = 1e-5
EXPANSION = 4
LANE = 128
APRON = 8          # tail rows of the tap buffer (keeps all 9 tap slices in bounds)


# ------------------------------ helpers ------------------------------------- #

def _round_up(x, m):
    return (x + m - 1) // m * m


def _vmem_limit_bytes():
    """Generation-aware VMEM limit: ~48 MiB on v7x (64 MiB physical), ~96 MiB on v5e/v6e."""
    cap = None
    try:
        info = pltpu.get_tpu_info()
        cap = getattr(info, "vmem_capacity_bytes", None)
    except Exception:
        cap = None
    if not cap:
        cap = 64 * 1024 * 1024                      # conservative (v7x-sized) default
    return int(min(cap * 3 // 4, 96 * 1024 * 1024))


def _choose_tile_rows(H, W, SP, cin_p, width_p, out_p, budget_bytes):
    """Largest output-row tile whose per-step VMEM footprint fits the budget."""
    def estimate(th):
        r_in = (th + 2) * SP
        r_out = th * SP
        x_blk = r_in * cin_p * 2 * 2                              # bf16, double buffered
        o_blk = th * W * out_p * 2 * 2                            # bf16, double buffered
        wgt = (cin_p * width_p + 9 * width_p * width_p + width_p * out_p) * 2 * 2
        buf = (r_in + APRON) * width_p * 2                        # tap buffer (bf16)
        live = r_in * width_p * 4 + r_out * (width_p + out_p) * 4 + r_out * width_p * 2
        return x_blk + o_blk + wgt + buf + live

    cands = [t for t in (256, 192, 128, 96, 64, 48, 32, 24, 16, 12, 8, 4, 2, 1) if t < H]
    if H <= 256:
        cands = [H] + cands
    for th in cands:
        if estimate(th) <= budget_bytes:
            return th
    return 1


def _pad2(w, rows, cols):
    return jnp.pad(w, ((0, rows - w.shape[0]), (0, cols - w.shape[1])))


def _fold_bn(bn, c_pad):
    gamma, beta, mean, var = bn
    scale = gamma / jnp.sqrt(var + EPS)
    bias = beta - mean * scale
    c = scale.shape[0]
    scale = jnp.pad(scale, (0, c_pad - c))
    bias = jnp.pad(bias, (0, c_pad - c))
    return scale[None, :].astype(jnp.float32), bias[None, :].astype(jnp.float32)


# ------------------------------ fused kernel -------------------------------- #

def _bottleneck_fused_kernel(xt_ref, mask_ref, w1_ref, w2_ref, w3_ref,
                             s1_ref, b1_ref, s2_ref, b2_ref, s3_ref, b3_ref,
                             o_ref, buf_ref, *, TH, SP, W):
    # xt_ref : (1, 1, R_in, cin_p) bf16 -- flattened, stride-padded x row-block (+1-row halo)
    # mask   : (1, R_in, 1) f32       -- 1.0 at real pixels, 0.0 at conv-padding positions
    # buf_ref: (R_in + APRON, width_p) bf16 VMEM scratch (conv2 tap buffer)
    # o_ref  : (1, 1, TH, W, out_p) bf16
    R_in = (TH + 2) * SP
    R_out = TH * SP
    width_p = w2_ref.shape[1]
    out_p = w3_ref.shape[1]

    xb = xt_ref[0, 0]                                             # (R_in, cin_p) bf16

    # ---- conv1 (1x1) + bn1 + relu; zero the conv2 padding positions ----
    y1 = jnp.dot(xb, w1_ref[...], preferred_element_type=jnp.float32)
    y1 = jnp.maximum(y1 * s1_ref[...] + b1_ref[...], 0.0)
    y1 = (y1 * mask_ref[0]).astype(jnp.bfloat16)

    # stage into the tap buffer; the small tail apron only ever feeds cropped outputs.
    buf_ref[0:R_in, :] = y1
    buf_ref[R_in:R_in + APRON, :] = jnp.zeros((APRON, width_p), jnp.bfloat16)

    # ---- conv2 (3x3, grouped via block-diagonal weights) + bn2 + relu ----
    # 3 shifted base views (one per kw); each is reused for the 3 kh taps whose offsets
    # are multiples of the 8-aligned row stride SP.  Taps accumulate into an f32 value.
    acc = None
    for kw in range(3):
        base = buf_ref[kw:kw + R_out + 2 * SP, :]                 # (R_out + 2*SP, width_p)
        for kh in range(3):
            tap = base[kh * SP:kh * SP + R_out]
            contrib = jnp.dot(tap, w2_ref[kh * 3 + kw],
                              preferred_element_type=jnp.float32)
            acc = contrib if acc is None else acc + contrib
    y2 = jnp.maximum(acc * s2_ref[...] + b2_ref[...], 0.0).astype(jnp.bfloat16)

    # ---- conv3 (1x1) + bn3 + residual add + relu ----
    y3 = jnp.dot(y2, w3_ref[...], preferred_element_type=jnp.float32)
    y3 = y3 * s3_ref[...] + b3_ref[...]
    ident = xb[SP + 1:SP + 1 + R_out, :].astype(jnp.float32)      # residual (cin_p == out_p)
    y3 = jnp.maximum(y3 + ident, 0.0)

    # ---- crop stride / conv-padding columns in-kernel and store only valid pixels ----
    y3 = y3.reshape(TH, SP, out_p)[:, :W, :]
    o_ref[0, 0] = y3.astype(o_ref.dtype)


# ------------------------------ parameters ---------------------------------- #

def init_bottleneck_params(key, inplanes, planes, groups=1, base_width=64):
    width = int(planes * (base_width / 64.0)) * groups
    out_ch = planes * EXPANSION
    keys = jax.random.split(key, 6)

    def bn_params(k, c):
        k1, k2, k3, k4 = jax.random.split(k, 4)
        gamma = jax.random.uniform(k1, (c,), jnp.float32, 0.5, 1.5)
        beta = 0.1 * jax.random.normal(k2, (c,), jnp.float32)
        mean = 0.1 * jax.random.normal(k3, (c,), jnp.float32)
        var = jax.random.uniform(k4, (c,), jnp.float32, 0.5, 1.5)
        return gamma, beta, mean, var

    return {
        # PyTorch conv weight layouts: (Cout, Cin/groups, kH, kW)
        'w1': 0.1 * jax.random.normal(keys[0], (width, inplanes, 1, 1), jnp.float32),
        'w2': 0.1 * jax.random.normal(keys[1], (width, width // groups, 3, 3), jnp.float32),
        'w3': 0.1 * jax.random.normal(keys[2], (out_ch, width, 1, 1), jnp.float32),
        'bn1': bn_params(keys[3], width),
        'bn2': bn_params(keys[4], width),
        'bn3': bn_params(keys[5], out_ch),
    }


# ------------------------------ forward ------------------------------------- #

def bottleneck_forward(x_nchw, params, groups=1, tile_rows=None):
    N, Cin, H, W = x_nchw.shape

    w1_t = jnp.transpose(params['w1'][:, :, 0, 0])                # (Cin, width)
    w3_t = jnp.transpose(params['w3'][:, :, 0, 0])                # (width, out_ch)
    width = w1_t.shape[1]
    out_ch = w3_t.shape[1]
    if out_ch != Cin:
        raise NotImplementedError("downsample branch / stride>1 not implemented "
                                  "(requires inplanes == planes * expansion)")

    cin_p = _round_up(Cin, LANE)
    width_p = _round_up(width, LANE)
    out_p = _round_up(out_ch, LANE)
    assert cin_p == out_p  # holds because out_ch == Cin (no-downsample path)

    # folded BatchNorm (inference mode), padded to lane-aligned channel counts
    s1, b1 = _fold_bn(params['bn1'], width_p)
    s2, b2 = _fold_bn(params['bn2'], width_p)
    s3, b3 = _fold_bn(params['bn3'], out_p)

    # weights: lane-aligned, bf16 for the MXU
    w1 = _pad2(w1_t, cin_p, width_p).astype(jnp.bfloat16)
    w3 = _pad2(w3_t, width_p, out_p).astype(jnp.bfloat16)

    # 3x3 grouped weights -> block-diagonal (9, width_p, width_p): one dense, lane-aligned
    # matmul per tap (fine for groups<=2; see TODO for large-group ResNeXt configs).
    cin_g = width // groups
    cout_g = width // groups
    w2 = params['w2'].reshape(groups, cout_g, cin_g, 3, 3)
    w2 = jnp.transpose(w2, (3, 4, 0, 2, 1)).reshape(9, groups, cin_g, cout_g)
    w2_bd = jnp.zeros((9, width_p, width_p), jnp.float32)
    for g in range(groups):
        w2_bd = w2_bd.at[:, g * cin_g:(g + 1) * cin_g,
                         g * cout_g:(g + 1) * cout_g].set(w2[:, g])
    w2_bd = w2_bd.astype(jnp.bfloat16)

    # geometry: flattened, stride-padded row layout per (image, row-block) tile
    SP = _round_up(W + 2, 8)                                      # flat row stride
    vmem_limit = _vmem_limit_bytes()
    TH = tile_rows or _choose_tile_rows(H, W, SP, cin_p, width_p, out_p,
                                        budget_bytes=vmem_limit // 2)
    TH = max(1, int(TH))
    nb = -(-H // TH)
    H_pad = nb * TH
    R_in = (TH + 2) * SP
    R_out = TH * SP

    # activations: NHWC, zero-padded (conv padding + stride padding + row-block padding),
    # gathered into per-block windows with a 1-row halo, flattened, bf16.
    x_nhwc = jnp.transpose(x_nchw, (0, 2, 3, 1))
    xp = jnp.pad(x_nhwc, ((0, 0), (1, H_pad - H + 1), (1, SP - 1 - W), (0, cin_p - Cin)))
    if nb == 1:
        x_tiles = xp[:, None]
    else:
        x_tiles = jnp.stack([xp[:, i * TH:i * TH + TH + 2] for i in range(nb)], axis=1)
    x_tiles = x_tiles.reshape(N, nb, R_in, cin_p).astype(jnp.bfloat16)

    # validity mask (1.0 at real pixels, 0.0 at conv-padding positions), per row-block
    lr = jnp.arange(TH + 2)[None, :, None]                        # local padded row
    lc = jnp.arange(SP)[None, None, :]                            # local padded col
    blk = jnp.arange(nb)[:, None, None]
    g_row = blk * TH + lr                                         # global padded row
    valid = (g_row >= 1) & (g_row <= H) & (lc >= 1) & (lc <= W)
    mask = valid.astype(jnp.float32).reshape(nb, R_in, 1)

    kernel = functools.partial(_bottleneck_fused_kernel, TH=TH, SP=SP, W=W)

    out5 = pl.pallas_call(
        kernel,
        out_shape=jax.ShapeDtypeStruct((N, nb, TH, W, out_p), jnp.bfloat16),
        grid=(N, nb),
        in_specs=[
            pl.BlockSpec((1, 1, R_in, cin_p), lambda n, i: (n, i, 0, 0)),
            pl.BlockSpec((1, R_in, 1), lambda n, i: (i, 0, 0)),
            pl.BlockSpec((cin_p, width_p), lambda n, i: (0, 0)),
            pl.BlockSpec((9, width_p, width_p), lambda n, i: (0, 0, 0)),
            pl.BlockSpec((width_p, out_p), lambda n, i: (0, 0)),
            pl.BlockSpec((1, width_p), lambda n, i: (0, 0)),
            pl.BlockSpec((1, width_p), lambda n, i: (0, 0)),
            pl.BlockSpec((1, width_p), lambda n, i: (0, 0)),
            pl.BlockSpec((1, width_p), lambda n, i: (0, 0)),
            pl.BlockSpec((1, out_p), lambda n, i: (0, 0)),
            pl.BlockSpec((1, out_p), lambda n, i: (0, 0)),
        ],
        out_specs=pl.BlockSpec((1, 1, TH, W, out_p), lambda n, i: (n, i, 0, 0, 0)),
        scratch_shapes=[pltpu.VMEM((R_in + APRON, width_p), jnp.bfloat16)],
        compiler_params=pltpu.CompilerParams(
            dimension_semantics=("parallel", "parallel"),
            vmem_limit_bytes=vmem_limit),
    )(x_tiles, mask, w1, w2_bd, w3, s1, b1, s2, b2, s3, b3)

    out = out5.reshape(N, H_pad, W, out_p)[:, :H, :, :out_ch]
    return jnp.transpose(out, (0, 3, 1, 2)).astype(jnp.float32)   # back to NCHW


# ------------------------------ reference ----------------------------------- #

def reference_bottleneck(x, params, groups=1, mimic_bf16=False):
    """Pure-JAX reference.  mimic_bf16=True mirrors the kernel's bf16 operand rounding."""
    cast = ((lambda a: a.astype(jnp.bfloat16).astype(jnp.float32))
            if mimic_bf16 else (lambda a: a))

    def conv(x, w, padding=0, grp=1):
        return jax.lax.conv_general_dilated(
            cast(x), cast(w), window_strides=(1, 1),
            padding=[(padding, padding)] * 2,
            feature_group_count=grp,
            dimension_numbers=('NCHW', 'OIHW', 'NCHW'))

    def bn(y, p):
        gamma, beta, mean, var = p
        s = gamma / jnp.sqrt(var + EPS)
        return y * s[None, :, None, None] + (beta - mean * s)[None, :, None, None]

    out = jax.nn.relu(bn(conv(x, params['w1']), params['bn1']))
    out = jax.nn.relu(bn(conv(out, params['w2'], padding=1, grp=groups), params['bn2']))
    out = bn(conv(out, params['w3']), params['bn3'])
    return jax.nn.relu(out + cast(x))


# ------------------------------ main ---------------------------------------- #

if __name__ == "__main__":
    key = jax.random.PRNGKey(0)
    N = 2
    configs = [
        # ResNet-style block (single grid row-block)
        dict(inplanes=16, planes=4, groups=1, base_width=64, H=8, W=8, tile_rows=None),
        # grouped (ResNeXt-style) block, forced row tiling to exercise the halo path
        dict(inplanes=32, planes=8, groups=2, base_width=64, H=16, W=16, tile_rows=8),
    ]
    for cfg in configs:
        kx, kp, key = jax.random.split(key, 3)
        x = jax.random.normal(kx, (N, cfg['inplanes'], cfg['H'], cfg['W']), jnp.float32)
        params = init_bottleneck_params(kp, cfg['inplanes'], cfg['planes'],
                                        groups=cfg['groups'],
                                        base_width=cfg['base_width'])

        fwd = jax.jit(functools.partial(bottleneck_forward, groups=cfg['groups'],
                                        tile_rows=cfg['tile_rows']))
        out = jax.block_until_ready(fwd(x, params))

        ref_bf = reference_bottleneck(x, params, groups=cfg['groups'], mimic_bf16=True)
        ref_f32 = reference_bottleneck(x, params, groups=cfg['groups'], mimic_bf16=False)

        err_bf = float(jnp.max(jnp.abs(out - ref_bf)))
        tol_bf = 1e-2 + 1e-2 * float(jnp.max(jnp.abs(ref_bf)))
        assert err_bf <= tol_bf, \
            f"cfg={cfg}: precision-matched err {err_bf} > tol {tol_bf}"

        err_f32 = float(jnp.max(jnp.abs(out - ref_f32)))
        tol_f32 = 5e-2 + 3e-2 * float(jnp.max(jnp.abs(ref_f32)))
        assert err_f32 <= tol_f32, \
            f"cfg={cfg}: f32-reference err {err_f32} > tol {tol_f32}"

    print("KERNEL_OK")
</pallas_src>

<mosaic_0001>
module attributes {stable_mosaic.version = 11 : i64} {
  func.func @_bottleneck_fused_kernel(%arg0: i32, %arg1: i32, %arg2: memref<1x1x160x128xbf16, #tpu.memory_space<vmem>>, %arg3: memref<1x160x1xf32, #tpu.memory_space<vmem>>, %arg4: memref<128x128xbf16, #tpu.memory_space<vmem>>, %arg5: memref<9x128x128xbf16, #tpu.memory_space<vmem>>, %arg6: memref<128x128xbf16, #tpu.memory_space<vmem>>, %arg7: memref<1x128xf32, #tpu.memory_space<vmem>>, %arg8: memref<1x128xf32, #tpu.memory_space<vmem>>, %arg9: memref<1x128xf32, #tpu.memory_space<vmem>>, %arg10: memref<1x128xf32, #tpu.memory_space<vmem>>, %arg11: memref<1x128xf32, #tpu.memory_space<vmem>>, %arg12: memref<1x128xf32, #tpu.memory_space<vmem>>, %arg13: memref<1x1x8x8x128xbf16, #tpu.memory_space<vmem>>, %arg14: memref<168x128xbf16, #tpu.memory_space<vmem>>) attributes {dimension_semantics = [#tpu.dimension_semantics<parallel>, #tpu.dimension_semantics<parallel>], iteration_bounds = array<i64: 2, 1>, scalar_prefetch = 0 : i64, scratch_operands = 1 : i64, tpu.core_type = #tpu.core_type<tc>, window_params = [{transform_indices = @transform_0, window_bounds = array<i64: 1, 1, 160, 128>}, {transform_indices = @transform_1, window_bounds = array<i64: 1, 160, 1>}, {pipeline_mode = #tpu.pipeline_mode<synchronous>, transform_indices = @transform_2, window_bounds = array<i64: 128, 128>}, {pipeline_mode = #tpu.pipeline_mode<synchronous>, transform_indices = @transform_3, window_bounds = array<i64: 9, 128, 128>}, {pipeline_mode = #tpu.pipeline_mode<synchronous>, transform_indices = @transform_4, window_bounds = array<i64: 128, 128>}, {pipeline_mode = #tpu.pipeline_mode<synchronous>, transform_indices = @transform_5, window_bounds = array<i64: 1, 128>}, {pipeline_mode = #tpu.pipeline_mode<synchronous>, transform_indices = @transform_6, window_bounds = array<i64: 1, 128>}, {pipeline_mode = #tpu.pipeline_mode<synchronous>, transform_indices = @transform_7, window_bounds = array<i64: 1, 128>}, {pipeline_mode = #tpu.pipeline_mode<synchronous>, transform_indices = @transform_8, window_bounds = array<i64: 1, 128>}, {pipeline_mode = #tpu.pipeline_mode<synchronous>, transform_indices = @transform_9, window_bounds = array<i64: 1, 128>}, {pipeline_mode = #tpu.pipeline_mode<synchronous>, transform_indices = @transform_10, window_bounds = array<i64: 1, 128>}, {transform_indices = @transform_11, window_bounds = array<i64: 1, 1, 8, 8, 128>}]} {
    %c0 = arith.constant 0 : index
    %c0_0 = arith.constant 0 : index
    %c0_1 = arith.constant 0 : index
    %c0_2 = arith.constant 0 : index
    %0 = vector.load %arg2[%c0, %c0_0, %c0_1, %c0_2] : memref<1x1x160x128xbf16, #tpu.memory_space<vmem>>, vector<1x1x160x128xbf16>
    %1 = vector.shape_cast %0 : vector<1x1x160x128xbf16> to vector<160x128xbf16>
    %c0_3 = arith.constant 0 : index
    %c0_4 = arith.constant 0 : index
    %2 = vector.load %arg4[%c0_3, %c0_4] : memref<128x128xbf16, #tpu.memory_space<vmem>>, vector<128x128xbf16>
    %cst = arith.constant dense<0.000000e+00> : vector<160x128xf32>
    %3 = tpu.matmul %1, %2, %cst {dimension_numbers = #tpu.dot_dimension_numbers<[1], [0], [0], [1], [0, 0, 1, 1], [], []>} : vector<160x128xbf16>, vector<128x128xbf16>, vector<160x128xf32> -> vector<160x128xf32>
    %c0_5 = arith.constant 0 : index
    %c0_6 = arith.constant 0 : index
    %4 = vector.load %arg7[%c0_5, %c0_6] : memref<1x128xf32, #tpu.memory_space<vmem>>, vector<1x128xf32>
    %5 = vector.broadcast %4 : vector<1x128xf32> to vector<160x128xf32>
    %6 = arith.mulf %3, %5 : vector<160x128xf32>
    %c0_7 = arith.constant 0 : index
    %c0_8 = arith.constant 0 : index
    %7 = vector.load %arg8[%c0_7, %c0_8] : memref<1x128xf32, #tpu.memory_space<vmem>>, vector<1x128xf32>
    %8 = vector.broadcast %7 : vector<1x128xf32> to vector<160x128xf32>
    %9 = arith.addf %6, %8 : vector<160x128xf32>
    %cst_9 = arith.constant 0.000000e+00 : f32
    %10 = vector.broadcast %cst_9 : f32 to vector<160x128xf32>
    %11 = arith.maximumf %9, %10 : vector<160x128xf32>
    %c0_10 = arith.constant 0 : index
    %c0_11 = arith.constant 0 : index
    %c0_12 = arith.constant 0 : index
    %12 = vector.load %arg3[%c0_10, %c0_11, %c0_12] : memref<1x160x1xf32, #tpu.memory_space<vmem>>, vector<1x160x1xf32>
    %13 = vector.shape_cast %12 : vector<1x160x1xf32> to vector<160x1xf32>
    %14 = vector.broadcast %13 : vector<160x1xf32> to vector<160x128xf32>
    %15 = arith.mulf %11, %14 : vector<160x128xf32>
    %16 = arith.truncf %15 : vector<160x128xf32> to vector<160x128xbf16>
    %c0_13 = arith.constant 0 : index
    %c0_14 = arith.constant 0 : index
    %17 = vector.load %arg14[%c0_13, %c0_14] : memref<168x128xbf16, #tpu.memory_space<vmem>>, vector<160x128xbf16>
    tpu.vector_store %arg14[%c0_13, %c0_14], %16 {strides = array<i32>} : memref<168x128xbf16, #tpu.memory_space<vmem>>, vector<160x128xbf16>,
    %cst_15 = arith.constant 0.000000e+00 : bf16
    %18 = vector.broadcast %cst_15 : bf16 to vector<8x128xbf16>
    %c160 = arith.constant 160 : index
    %c0_16 = arith.constant 0 : index
    %19 = vector.load %arg14[%c160, %c0_16] : memref<168x128xbf16, #tpu.memory_space<vmem>>, vector<8x128xbf16>
    tpu.vector_store %arg14[%c160, %c0_16], %18 {strides = array<i32>} : memref<168x128xbf16, #tpu.memory_space<vmem>>, vector<8x128xbf16>,
    %c0_17 = arith.constant 0 : index
    %c0_18 = arith.constant 0 : index
    %20 = vector.load %arg14[%c0_17, %c0_18] : memref<168x128xbf16, #tpu.memory_space<vmem>>, vector<160x128xbf16>
    %21 = vector.extract_strided_slice %20 {offsets = [0, 0], sizes = [128, 128], strides = [1, 1]} : vector<160x128xbf16> to vector<128x128xbf16>
    %c0_19 = arith.constant 0 : index
    %c0_20 = arith.constant 0 : index
    %c0_21 = arith.constant 0 : index
    %22 = vector.load %arg5[%c0_19, %c0_20, %c0_21] : memref<9x128x128xbf16, #tpu.memory_space<vmem>>, vector<1x128x128xbf16>
    %23 = vector.shape_cast %22 : vector<1x128x128xbf16> to vector<128x128xbf16>
    %cst_22 = arith.constant dense<0.000000e+00> : vector<128x128xf32>
    %24 = tpu.matmul %21, %23, %cst_22 {dimension_numbers = #tpu.dot_dimension_numbers<[1], [0], [0], [1], [0, 0, 1, 1], [], []>} : vector<128x128xbf16>, vector<128x128xbf16>, vector<128x128xf32> -> vector<128x128xf32>
    %25 = vector.extract_strided_slice %20 {offsets = [16, 0], sizes = [128, 128], strides = [1, 1]} : vector<160x128xbf16> to vector<128x128xbf16>
    %c3 = arith.constant 3 : index
    %c0_23 = arith.constant 0 : index
    %c0_24 = arith.constant 0 : index
    %26 = vector.load %arg5[%c3, %c0_23, %c0_24] : memref<9x128x128xbf16, #tpu.memory_space<vmem>>, vector<1x128x128xbf16>
    %27 = vector.shape_cast %26 : vector<1x128x128xbf16> to vector<128x128xbf16>
    %cst_25 = arith.constant dense<0.000000e+00> : vector<128x128xf32>
    %28 = tpu.matmul %25, %27, %cst_25 {dimension_numbers = #tpu.dot_dimension_numbers<[1], [0], [0], [1], [0, 0, 1, 1], [], []>} : vector<128x128xbf16>, vector<128x128xbf16>, vector<128x128xf32> -> vector<128x128xf32>
    %29 = arith.addf %24, %28 : vector<128x128xf32>
    %30 = vector.extract_strided_slice %20 {offsets = [32, 0], sizes = [128, 128], strides = [1, 1]} : vector<160x128xbf16> to vector<128x128xbf16>
    %c6 = arith.constant 6 : index
    %c0_26 = arith.constant 0 : index
    %c0_27 = arith.constant 0 : index
    %31 = vector.load %arg5[%c6, %c0_26, %c0_27] : memref<9x128x128xbf16, #tpu.memory_space<vmem>>, vector<1x128x128xbf16>
    %32 = vector.shape_cast %31 : vector<1x128x128xbf16> to vector<128x128xbf16>
    %cst_28 = arith.constant dense<0.000000e+00> : vector<128x128xf32>
    %33 = tpu.matmul %30, %32, %cst_28 {dimension_numbers = #tpu.dot_dimension_numbers<[1], [0], [0], [1], [0, 0, 1, 1], [], []>} : vector<128x128xbf16>, vector<128x128xbf16>, vector<128x128xf32> -> vector<128x128xf32>
    %34 = arith.addf %29, %33 : vector<128x128xf32>
    %c1 = arith.constant 1 : index
    %c0_29 = arith.constant 0 : index
    %35 = vector.load %arg14[%c1, %c0_29] : memref<168x128xbf16, #tpu.memory_space<vmem>>, vector<160x128xbf16>
    %36 = vector.extract_strided_slice %35 {offsets = [0, 0], sizes = [128, 128], strides = [1, 1]} : vector<160x128xbf16> to vector<128x128xbf16>
    %c1_30 = arith.constant 1 : index
    %c0_31 = arith.constant 0 : index
    %c0_32 = arith.constant 0 : index
    %37 = vector.load %arg5[%c1_30, %c0_31, %c0_32] : memref<9x128x128xbf16, #tpu.memory_space<vmem>>, vector<1x128x128xbf16>
    %38 = vector.shape_cast %37 : vector<1x128x128xbf16> to vector<128x128xbf16>
    %cst_33 = arith.constant dense<0.000000e+00> : vector<128x128xf32>
    %39 = tpu.matmul %36, %38, %cst_33 {dimension_numbers = #tpu.dot_dimension_numbers<[1], [0], [0], [1], [0, 0, 1, 1], [], []>} : vector<128x128xbf16>, vector<128x128xbf16>, vector<128x128xf32> -> vector<128x128xf32>
    %40 = arith.addf %34, %39 : vector<128x128xf32>
    %41 = vector.extract_strided_slice %35 {offsets = [16, 0], sizes = [128, 128], strides = [1, 1]} : vector<160x128xbf16> to vector<128x128xbf16>
    %c4 = arith.constant 4 : index
    %c0_34 = arith.constant 0 : index
    %c0_35 = arith.constant 0 : index
    %42 = vector.load %arg5[%c4, %c0_34, %c0_35] : memref<9x128x128xbf16, #tpu.memory_space<vmem>>, vector<1x128x128xbf16>
    %43 = vector.shape_cast %42 : vector<1x128x128xbf16> to vector<128x128xbf16>
    %cst_36 = arith.constant dense<0.000000e+00> : vector<128x128xf32>
    %44 = tpu.matmul %41, %43, %cst_36 {dimension_numbers = #tpu.dot_dimension_numbers<[1], [0], [0], [1], [0, 0, 1, 1], [], []>} : vector<128x128xbf16>, vector<128x128xbf16>, vector<128x128xf32> -> vector<128x128xf32>
    %45 = arith.addf %40, %44 : vector<128x128xf32>
    %46 = vector.extract_strided_slice %35 {offsets = [32, 0], sizes = [128, 128], strides = [1, 1]} : vector<160x128xbf16> to vector<128x128xbf16>
    %c7 = arith.constant 7 : index
    %c0_37 = arith.constant 0 : index
    %c0_38 = arith.constant 0 : index
    %47 = vector.load %arg5[%c7, %c0_37, %c0_38] : memref<9x128x128xbf16, #tpu.memory_space<vmem>>, vector<1x128x128xbf16>
    %48 = vector.shape_cast %47 : vector<1x128x128xbf16> to vector<128x128xbf16>
    %cst_39 = arith.constant dense<0.000000e+00> : vector<128x128xf32>
    %49 = tpu.matmul %46, %48, %cst_39 {dimension_numbers = #tpu.dot_dimension_numbers<[1], [0], [0], [1], [0, 0, 1, 1], [], []>} : vector<128x128xbf16>, vector<128x128xbf16>, vector<128x128xf32> -> vector<128x128xf32>
    %50 = arith.addf %45, %49 : vector<128x128xf32>
    %c2 = arith.constant 2 : index
    %c0_40 = arith.constant 0 : index
    %51 = vector.load %arg14[%c2, %c0_40] : memref<168x128xbf16, #tpu.memory_space<vmem>>, vector<160x128xbf16>
    %52 = vector.extract_strided_slice %51 {offsets = [0, 0], sizes = [128, 128], strides = [1, 1]} : vector<160x128xbf16> to vector<128x128xbf16>
    %c2_41 = arith.constant 2 : index
    %c0_42 = arith.constant 0 : index
    %c0_43 = arith.constant 0 : index
    %53 = vector.load %arg5[%c2_41, %c0_42, %c0_43] : memref<9x128x128xbf16, #tpu.memory_space<vmem>>, vector<1x128x128xbf16>
    %54 = vector.shape_cast %53 : vector<1x128x128xbf16> to vector<128x128xbf16>
    %cst_44 = arith.constant dense<0.000000e+00> : vector<128x128xf32>
    %55 = tpu.matmul %52, %54, %cst_44 {dimension_numbers = #tpu.dot_dimension_numbers<[1], [0], [0], [1], [0, 0, 1, 1], [], []>} : vector<128x128xbf16>, vector<128x128xbf16>, vector<128x128xf32> -> vector<128x128xf32>
    %56 = arith.addf %50, %55 : vector<128x128xf32>
    %57 = vector.extract_strided_slice %51 {offsets = [16, 0], sizes = [128, 128], strides = [1, 1]} : vector<160x128xbf16> to vector<128x128xbf16>
    %c5 = arith.constant 5 : index
    %c0_45 = arith.constant 0 : index
    %c0_46 = arith.constant 0 : index
    %58 = vector.load %arg5[%c5, %c0_45, %c0_46] : memref<9x128x128xbf16, #tpu.memory_space<vmem>>, vector<1x128x128xbf16>
    %59 = vector.shape_cast %58 : vector<1x128x128xbf16> to vector<128x128xbf16>
    %cst_47 = arith.constant dense<0.000000e+00> : vector<128x128xf32>
    %60 = tpu.matmul %57, %59, %cst_47 {dimension_numbers = #tpu.dot_dimension_numbers<[1], [0], [0], [1], [0, 0, 1, 1], [], []>} : vector<128x128xbf16>, vector<128x128xbf16>, vector<128x128xf32> -> vector<128x128xf32>
    %61 = arith.addf %56, %60 : vector<128x128xf32>
    %62 = vector.extract_strided_slice %51 {offsets = [32, 0], sizes = [128, 128], strides = [1, 1]} : vector<160x128xbf16> to vector<128x128xbf16>
    %c8 = arith.constant 8 : index
    %c0_48 = arith.constant 0 : index
    %c0_49 = arith.constant 0 : index
    %63 = vector.load %arg5[%c8, %c0_48, %c0_49] : memref<9x128x128xbf16, #tpu.memory_space<vmem>>, vector<1x128x128xbf16>
    %64 = vector.shape_cast %63 : vector<1x128x128xbf16> to vector<128x128xbf16>
    %cst_50 = arith.constant dense<0.000000e+00> : vector<128x128xf32>
    %65 = tpu.matmul %62, %64, %cst_50 {dimension_numbers = #tpu.dot_dimension_numbers<[1], [0], [0], [1], [0, 0, 1, 1], [], []>} : vector<128x128xbf16>, vector<128x128xbf16>, vector<128x128xf32> -> vector<128x128xf32>
    %66 = arith.addf %61, %65 : vector<128x128xf32>
    %c0_51 = arith.constant 0 : index
    %c0_52 = arith.constant 0 : index
    %67 = vector.load %arg9[%c0_51, %c0_52] : memref<1x128xf32, #tpu.memory_space<vmem>>, vector<1x128xf32>
    %68 = vector.broadcast %67 : vector<1x128xf32> to vector<128x128xf32>
    %69 = arith.mulf %66, %68 : vector<128x128xf32>
    %c0_53 = arith.constant 0 : index
    %c0_54 = arith.constant 0 : index
    %70 = vector.load %arg10[%c0_53, %c0_54] : memref<1x128xf32, #tpu.memory_space<vmem>>, vector<1x128xf32>
    %71 = vector.broadcast %70 : vector<1x128xf32> to vector<128x128xf32>
    %72 = arith.addf %69, %71 : vector<128x128xf32>
    %cst_55 = arith.constant 0.000000e+00 : f32
    %73 = vector.broadcast %cst_55 : f32 to vector<128x128xf32>
    %74 = arith.maximumf %72, %73 : vector<128x128xf32>
    %75 = arith.truncf %74 : vector<128x128xf32> to vector<128x128xbf16>
    %c0_56 = arith.constant 0 : index
    %c0_57 = arith.constant 0 : index
    %76 = vector.load %arg6[%c0_56, %c0_57] : memref<128x128xbf16, #tpu.memory_space<vmem>>, vector<128x128xbf16>
    %cst_58 = arith.constant dense<0.000000e+00> : vector<128x128xf32>
    %77 = tpu.matmul %75, %76, %cst_58 {dimension_numbers = #tpu.dot_dimension_numbers<[1], [0], [0], [1], [0, 0, 1, 1], [], []>} : vector<128x128xbf16>, vector<128x128xbf16>, vector<128x128xf32> -> vector<128x128xf32>
    %c0_59 = arith.constant 0 : index
    %c0_60 = arith.constant 0 : index
    %78 = vector.load %arg11[%c0_59, %c0_60] : memref<1x128xf32, #tpu.memory_space<vmem>>, vector<1x128xf32>
    %79 = vector.broadcast %78 : vector<1x128xf32> to vector<128x128xf32>
    %80 = arith.mulf %77, %79 : vector<128x128xf32>
    %c0_61 = arith.constant 0 : index
    %c0_62 = arith.constant 0 : index
    %81 = vector.load %arg12[%c0_61, %c0_62] : memref<1x128xf32, #tpu.memory_space<vmem>>, vector<1x128xf32>
    %82 = vector.broadcast %81 : vector<1x128xf32> to vector<128x128xf32>
    %83 = arith.addf %80, %82 : vector<128x128xf32>
    %84 = vector.extract_strided_slice %1 {offsets = [17, 0], sizes = [128, 128], strides = [1, 1]} : vector<160x128xbf16> to vector<128x128xbf16>
    %85 = arith.extf %84 : vector<128x128xbf16> to vector<128x128xf32>
    %86 = arith.addf %83, %85 : vector<128x128xf32>
    %cst_63 = arith.constant 0.000000e+00 : f32
    %87 = vector.broadcast %cst_63 : f32 to vector<128x128xf32>
    %88 = arith.maximumf %86, %87 : vector<128x128xf32>
    %89 = vector.shape_cast %88 : vector<128x128xf32> to vector<8x16x128xf32>
    %90 = vector.extract_strided_slice %89 {offsets = [0, 0, 0], sizes = [8, 8, 128], strides = [1, 1, 1]} : vector<8x16x128xf32> to vector<8x8x128xf32>
    %91 = arith.truncf %90 : vector<8x8x128xf32> to vector<8x8x128xbf16>
    %c0_64 = arith.constant 0 : index
    %c0_65 = arith.constant 0 : index
    %c0_66 = arith.constant 0 : index
    %c0_67 = arith.constant 0 : index
    %c0_68 = arith.constant 0 : index
    %92 = vector.load %arg13[%c0_64, %c0_65, %c0_66, %c0_67, %c0_68] : memref<1x1x8x8x128xbf16, #tpu.memory_space<vmem>>, vector<1x1x8x8x128xbf16>
    %93 = vector.shape_cast %92 : vector<1x1x8x8x128xbf16> to vector<8x8x128xbf16>
    %94 = vector.shape_cast %91 : vector<8x8x128xbf16> to vector<1x1x8x8x128xbf16>
    tpu.vector_store %arg13[%c0_64, %c0_65, %c0_66, %c0_67, %c0_68], %94 {strides = array<i32>} : memref<1x1x8x8x128xbf16, #tpu.memory_space<vmem>>, vector<1x1x8x8x128xbf16>,
    return
  }
  func.func @transform_0(%arg0: i32, %arg1: i32) -> (i32, i32, i32, i32) {
    %c0_i32 = arith.constant 0 : i32
    %c0_i32_0 = arith.constant 0 : i32
    %c0_i32_1 = arith.constant 0 : i32
    return %arg0, %arg1, %c0_i32, %c0_i32_0 : i32, i32, i32, i32
  }
  func.func @transform_1(%arg0: i32, %arg1: i32) -> (i32, i32, i32) {
    %c0_i32 = arith.constant 0 : i32
    %c0_i32_0 = arith.constant 0 : i32
    %c0_i32_1 = arith.constant 0 : i32
    return %arg1, %c0_i32, %c0_i32_0 : i32, i32, i32
  }
  func.func @transform_2(%arg0: i32, %arg1: i32) -> (i32, i32) {
    %c0_i32 = arith.constant 0 : i32
    %c0_i32_0 = arith.constant 0 : i32
    %c0_i32_1 = arith.constant 0 : i32
    return %c0_i32, %c0_i32_0 : i32, i32
  }
  func.func @transform_3(%arg0: i32, %arg1: i32) -> (i32, i32, i32) {
    %c0_i32 = arith.constant 0 : i32
    %c0_i32_0 = arith.constant 0 : i32
    %c0_i32_1 = arith.constant 0 : i32
    %c0_i32_2 = arith.constant 0 : i32
    return %c0_i32, %c0_i32_0, %c0_i32_1 : i32, i32, i32
  }
  func.func @transform_4(%arg0: i32, %arg1: i32) -> (i32, i32) {
    %c0_i32 = arith.constant 0 : i32
    %c0_i32_0 = arith.constant 0 : i32
    %c0_i32_1 = arith.constant 0 : i32
    return %c0_i32, %c0_i32_0 : i32, i32
  }
  func.func @transform_5(%arg0: i32, %arg1: i32) -> (i32, i32) {
    %c0_i32 = arith.constant 0 : i32
    %c0_i32_0 = arith.constant 0 : i32
    %c0_i32_1 = arith.constant 0 : i32
    return %c0_i32, %c0_i32_0 : i32, i32
  }
  func.func @transform_6(%arg0: i32, %arg1: i32) -> (i32, i32) {
    %c0_i32 = arith.constant 0 : i32
    %c0_i32_0 = arith.constant 0 : i32
    %c0_i32_1 = arith.constant 0 : i32
    return %c0_i32, %c0_i32_0 : i32, i32
  }
  func.func @transform_7(%arg0: i32, %arg1: i32) -> (i32, i32) {
    %c0_i32 = arith.constant 0 : i32
    %c0_i32_0 = arith.constant 0 : i32
    %c0_i32_1 = arith.constant 0 : i32
    return %c0_i32, %c0_i32_0 : i32, i32
  }
  func.func @transform_8(%arg0: i32, %arg1: i32) -> (i32, i32) {
    %c0_i32 = arith.constant 0 : i32
    %c0_i32_0 = arith.constant 0 : i32
    %c0_i32_1 = arith.constant 0 : i32
    return %c0_i32, %c0_i32_0 : i32, i32
  }
  func.func @transform_9(%arg0: i32, %arg1: i32) -> (i32, i32) {
    %c0_i32 = arith.constant 0 : i32
    %c0_i32_0 = arith.constant 0 : i32
    %c0_i32_1 = arith.constant 0 : i32
    return %c0_i32, %c0_i32_0 : i32, i32
  }
  func.func @transform_10(%arg0: i32, %arg1: i32) -> (i32, i32) {
    %c0_i32 = arith.constant 0 : i32
    %c0_i32_0 = arith.constant 0 : i32
    %c0_i32_1 = arith.constant 0 : i32
    return %c0_i32, %c0_i32_0 : i32, i32
  }
  func.func @transform_11(%arg0: i32, %arg1: i32) -> (i32, i32, i32, i32, i32) {
    %c0_i32 = arith.constant 0 : i32
    %c0_i32_0 = arith.constant 0 : i32
    %c0_i32_1 = arith.constant 0 : i32
    %c0_i32_2 = arith.constant 0 : i32
    return %arg0, %arg1, %c0_i32, %c0_i32_0, %c0_i32_1 : i32, i32, i32, i32, i32
  }
}

</mosaic_0001>

<bundles_post_ra>
// kernel: bottleneck_forward.1
= control target key start
LH: loop header
LB: loop body
LE: loop exit
PB: predicated region body
PF: predicated region fallthrough
CT: control target
= control target key end

     0   :  { %s4651_s17 = smov 0   ;;  %s4653_s18 = smov 0   ;;  %s5378_s0 = inlined_call_operand.vmem [shape: bf16[2,1,160,128], index: 0, kind: input, shape index: {}]   ;;  %s5379_s1 = inlined_call_operand.vmem [shape: f32[1,160,1], index: 1, kind: input, shape index: {}]   ;;  %s5380_s2 = inlined_call_operand.vmem [shape: bf16[128,128], index: 2, kind: input, shape index: {}]   ;;  %s5381_s3 = inlined_call_operand.vmem [shape: bf16[9,128,128], index: 3, kind: input, shape index: {}]   ;;  %s5382_s4 = inlined_call_operand.vmem [shape: bf16[128,128], index: 4, kind: input, shape index: {}]   ;;  %s5383_s5 = inlined_call_operand.vmem [shape: f32[1,128], index: 5, kind: input, shape index: {}]   ;;  %s5384_s6 = inlined_call_operand.vmem [shape: f32[1,128], index: 6, kind: input, shape index: {}]   ;;  %s5385_s7 = inlined_call_operand.vmem [shape: f32[1,128], index: 7, kind: input, shape index: {}]   ;;  %s5386_s8 = inlined_call_operand.vmem [shape: f32[1,128], index: 8, kind: input, shape index: {}]   ;;  %s5387_s9 = inlined_call_operand.vmem [shape: f32[1,128], index: 9, kind: input, shape index: {}]   ;;  %s5388_s10 = inlined_call_operand.vmem [shape: f32[1,128], index: 10, kind: input, shape index: {}]   ;;  %s5389_s11 = inlined_call_operand.vmem [shape: bf16[2,1,8,8,128], index: 11, kind: output, shape index: {}]  }
   0x1   :  { %s4655_s19 = smov 0  }
   0x2 LB: > { %s33_s20 = sadd.s32 1, %s4584_s18  ;;  %p3353_p0 = scmp.ge.s32.totalorder %s4588_s19, 1  ;;  %s4588_s19 = sphi %s4655_s19, %s21_s19   ;;  %s4584_s18 = sphi %s4653_s18, %s5391_s18   ;;  %s4580_s17 = sphi %s4651_s17, %s5390_s17  }
   0x3   : > { %p35_p1 = scmp.ge.s32.totalorder %s33_s20, 2  ;;  %p367_p2 = scmp.lt.s32.totalorder %s4588_s19, 3 }
   0x5   : > { %s5393_s20 = smov (%p35_p1, %s33_s20), 0  ;;  %p368_p3 = pnand %p3353_p0, %p367_p2 }
   0x6   : > { %v4428_v0 = vld [vmem:[%s5380_s2] sm:$0xff] (!%p368_p3)   ;;  %p420_p4 = scmp.lt.s32.totalorder (!%p368_p3), %s4580_s17, 1  ;;  %v4429_v1 = vld [vmem:[%s5380_s2 + $0x8] sm:$0xff] (!%p368_p3)   ;;  %v4590_v2 = vmov (!%p368_p3), 0   ;;  %v4430_v3 = vld [vmem:[%s5380_s2 + $0x10] sm:$0xff] (!%p368_p3)   ;;  %vm2335_vm1 = vcmask (!%p368_p3), 1046528  }
   0x7   : > { %371 = sbr.rel (%p368_p3) target bundleno = 922 (0x39a), region = 64  ;;  %3916 = vmatprep.subr.bf16.mxu0 (!%p368_p3), %v4428_v0  ;;  %4427 = vset.pattern.permute.xlu1 (!%p368_p3), %v4590_v2  ;;  %1015 = vst [vmem:[#allocation2 + $0x50] sm:$0xf] (!%p368_p3), %v4590_v2  ;;  %v4431_v4 = vld [vmem:[%s5380_s2 + $0x18] sm:$0xff] (!%p368_p3)   ;;  %v4432_v6 = vld [vmem:[%s5380_s2 + $0x20] sm:$0xff] (!%p368_p3)   ;;  %v777_v7 = vld [vmem:[%s5379_s1 + $0x10] sm:$0xff] (!%p368_p3) }
   0x8   : > { %3917 = vmatpush3.bf16.msra.mxu0 (!%p368_p3), %v4428_v0  ;;  %4426 = vset.pattern.permute.xlu0 (!%p368_p3), %v4590_v2  ;;  %v775_v8 = vld [vmem:[%s5379_s1] sm:$0xff] (!%p368_p3)  ;;  %v778_v9 = vld [vmem:[%s5379_s1 + $0x18] sm:$0xff] (!%p368_p3)  ;;  %v776_v10 = vld [vmem:[%s5379_s1 + $0x8] sm:$0xff] (!%p368_p3)  ;;  %vm1678_vm0 = vsmask.f32 (!%p368_p3), 7424 }
   0x9   : > { %3918 = vmatprep.subr.bf16.mxu0 (!%p368_p3), %v4429_v1  ;;  %807 = vperm.xlu1 (!%p368_p3), %4427, %v777_v7   ;;  %v4433_v11 = vld [vmem:[%s5380_s2 + $0x28] sm:$0xff] (!%p368_p3)   ;;  %v4434_v13 = vld [vmem:[%s5380_s2 + $0x30] sm:$0xff] (!%p368_p3)   ;;  %v779_v14 = vld [vmem:[%s5379_s1 + $0x20] sm:$0xff] (!%p368_p3) }
   0xa   : > { %797 = vperm.xlu0 (!%p368_p3), %4426, %v775_v8   ;;  %v780_v12 = vld [vmem:[%s5379_s1 + $0x28] sm:$0xff] (!%p368_p3)  ;;  %v782_v15 = vld [vmem:[%s5379_s1 + $0x38] sm:$0xff] (!%p368_p3)  ;;  %v781_v16 = vld [vmem:[%s5379_s1 + $0x30] sm:$0xff] (!%p368_p3) }
   0xb   : > { %v4435_v17 = vld [vmem:[%s5380_s2 + $0x38] sm:$0xff] (!%p368_p3)   ;;  %v784_v18 = vld [vmem:[%s5379_s1 + $0x48] sm:$0xff] (!%p368_p3)  ;;  %v783_v20 = vld [vmem:[%s5379_s1 + $0x40] sm:$0xff] (!%p368_p3) }
   0xc   : > { %3919 = vmatpush3.bf16.msra.mxu0 (!%p368_p3), %v4429_v1  ;;  %v786_v22 = vld [vmem:[%s5379_s1 + $0x58] sm:$0xff] (!%p368_p3)  ;;  %v785_v23 = vld [vmem:[%s5379_s1 + $0x50] sm:$0xff] (!%p368_p3)  ;;  %v788_v24 = vld [vmem:[%s5379_s1 + $0x68] sm:$0xff] (!%p368_p3) }
   0xd   : > { %3920 = vmatprep.subr.bf16.mxu0 (!%p368_p3), %v4430_v3  ;;  %812 = vperm.xlu1 (!%p368_p3), %4427, %v778_v9   ;;  %v787_v26 = vld [vmem:[%s5379_s1 + $0x60] sm:$0xff] (!%p368_p3)  ;;  %v790_v28 = vld [vmem:[%s5379_s1 + $0x78] sm:$0xff] (!%p368_p3)  ;;  %v789_v29 = vld [vmem:[%s5379_s1 + $0x70] sm:$0xff] (!%p368_p3) }
   0xe   : > { %s5395_s17 = smov (!%p420_p4, %s4580_s17), 1  ;;  %802 = vperm.xlu0 %4426, %v776_v10   ;;  %v792_v30 = vld [vmem:[%s5379_s1 + $0x88] sm:$0xff]  ;;  %v791_v32 = vld [vmem:[%s5379_s1 + $0x80] sm:$0xff]  ;;  %v794_v34 = vld [vmem:[%s5379_s1 + $0x98] sm:$0xff] }
   0xf   : > { %s4400_s27 = smul.u32 80, %s5395_s17  ;;  %v793_v35 = vld [vmem:[%s5379_s1 + $0x90] sm:$0xff]  ;;  %v4446_v39 = vld [vmem:[%s5381_s3 + $0xc0] sm:$0xff]   ;;  %v4447_v40 = vld [vmem:[%s5381_s3 + $0xc8] sm:$0xff]   ;;  %s3635_s28 = sshll.u32 %s5395_s17, 5 }
  0x10   : > { %3921 = vmatpush3.bf16.msra.mxu0 %v4430_v3  ;;  %v4448_v41 = vld [vmem:[%s5381_s3 + $0x40] sm:$0xff]   ;;  %v4449_v42 = vld [vmem:[%s5381_s3 + $0xd0] sm:$0xff]   ;;  %v4450_v43 = vld [vmem:[%s5381_s3 + $0x48] sm:$0xff]   ;;  %s5342_s13 = scalar_lea.vmem %s5389_s11, %s3635_s28 }
  0x11   : > { %s4684_s30 = scalar_lea.vmem %s5378_s0, %s4400_s27  ;;  %3922 = vmatprep.subr.bf16.mxu0 %v4431_v4  ;;  %822 = vperm.xlu1 %4427, %v780_v12   ;;  %v4451_v44 = vld [vmem:[%s5381_s3 + $0xd8] sm:$0xff]   ;;  %v4452_v45 = vld [vmem:[%s5381_s3 + $0x50] sm:$0xff]   ;;  %v4453_v46 = vld [vmem:[%s5381_s3 + $0xe0] sm:$0xff]  }
  0x12   : > { %v4436_v5 = vld [vmem:[%s4684_s30] sm:$0xff]   ;;  %817 = vperm.xlu0 %4426, %v779_v14   ;;  %v446_v19 = vld [vmem:[%s4684_s30 + $0x8] sm:$0xff]   ;;  %v448_v21 = vld [vmem:[%s4684_s30 + $0x10] sm:$0xff]   ;;  %4048 = vmatprep.subr.bf16.mxu1 %v4448_v41 }
  0x13   : > { %3932 = vmatprep.mubr.bf16.mxu0 %v4436_v5  ;;  %v450_v25 = vld [vmem:[%s4684_s30 + $0x18] sm:$0xff]   ;;  %v452_v27 = vld [vmem:[%s4684_s30 + $0x20] sm:$0xff]   ;;  %v454_v31 = vld [vmem:[%s4684_s30 + $0x28] sm:$0xff]   ;;  %4049 = vmatpush3.bf16.msra.mxu1 %v4448_v41 }
  0x14   : > { %3923 = vmatpush3.bf16.msra.mxu0 %v4431_v4  ;;  %v456_v33 = vld [vmem:[%s4684_s30 + $0x30] sm:$0xff]   ;;  %v458_v36 = vld [vmem:[%s4684_s30 + $0x38] sm:$0xff]   ;;  %v460_v37 = vld [vmem:[%s4684_s30 + $0x40] sm:$0xff]   ;;  %4050 = vmatprep.subr.bf16.mxu1 %v4450_v43 }
  0x15   : > { %3924 = vmatprep.subr.bf16.mxu0 %v4432_v6  ;;  %832 = vperm.xlu1 %4427, %v782_v15   ;;  %v4445_v38 = vld [vmem:[%s4684_s30 + $0x48] sm:$0xff]   ;;  %v4454_v47 = vld [vmem:[%s5381_s3 + $0x58] sm:$0xff]   ;;  %v4456_v49 = vld [vmem:[%s5381_s3 + $0x60] sm:$0xff]  }
  0x16   : > { %827 = vperm.xlu0 %4426, %v781_v16   ;;  %v4455_v48 = vld [vmem:[%s5381_s3 + $0xe8] sm:$0xff]   ;;  %v4458_v50 = vld [vmem:[%s5381_s3 + $0xf0] sm:$0xff]   ;;  %v4460_v52 = vld [vmem:[%s5381_s3 + $0xf8] sm:$0xff]  }
  0x17   : > { %4051 = vmatpush3.bf16.msra.mxu1 %v4450_v43  ;;  %v4459_v51 = vld [vmem:[%s5381_s3 + $0x68] sm:$0xff]   ;;  %v4461_v53 = vld [vmem:[%s5381_s3 + $0x70] sm:$0xff]   ;;  %v4819_v54 = vld [vmem:[%s5381_s3] sm:$0xff]  }
  0x18   : > { %3925 = vmatpush3.bf16.msra.mxu0 %v4432_v6  ;;  %4052 = vmatprep.subr.bf16.mxu1 %v4452_v45  ;;  %v4466_v55 = vld [vmem:[%s5381_s3 + $0x78] sm:$0xff]   ;;  %v4828_v56 = vld [vmem:[%s5381_s3 + $0x100] sm:$0xff]  }
  0x19   : > { %3926 = vmatprep.subr.bf16.mxu0 %v4433_v11  ;;  %842 = vperm.xlu1 %4427, %v784_v18   ;;  %v4834_v63 = vld [vmem:[%s5383_s5] ss:$0 sm:$0xff] }
  0x1a   : > { %837 = vperm.xlu0 %4426, %v783_v20   ;;  %v4839_v1 = vld [vmem:[%s5384_s6] ss:$0 sm:$0xff] }
  0x1b   : > { %4053 = vmatpush3.bf16.msra.mxu1 %v4452_v45 }
  0x1c   : > { %3927 = vmatpush3.bf16.msra.mxu0 %v4433_v11  ;;  %4054 = vmatprep.subr.bf16.mxu1 %v4454_v47 }
  0x1d   : > { %3928 = vmatprep.subr.bf16.mxu0 %v4434_v13  ;;  %852 = vperm.xlu1 %4427, %v786_v22  }
  0x1e   : > { %847 = vperm.xlu0 %4426, %v785_v23  }
  0x1f   : > { %4055 = vmatpush3.bf16.msra.mxu1 %v4454_v47 }
  0x20   : > { %3929 = vmatpush3.bf16.msra.mxu0 %v4434_v13  ;;  %4056 = vmatprep.subr.bf16.mxu1 %v4456_v49 }
  0x21   : > { %3930 = vmatprep.subr.bf16.mxu0 %v4435_v17  ;;  %862 = vperm.xlu1 %4427, %v788_v24  }
  0x22   : > { %857 = vperm.xlu0 %4426, %v787_v26  }
  0x23   : > { %4057 = vmatpush3.bf16.msra.mxu1 %v4456_v49 }
  0x24   : > { %3931 = vmatpush3.bf16.msra.mxu0 %v4435_v17  ;;  %4058 = vmatprep.subr.bf16.mxu1 %v4459_v51 }
  0x25   : > { %872 = vperm.xlu1 %4427, %v790_v28   ;;  %3952 = vmatprep.subr.bf16.mxu0 %v4446_v39 }
  0x26   : > { %867 = vperm.xlu0 %4426, %v789_v29  }
  0x27   : > { %3933 = vmatmul.mubr.bf16.vlgmr.msra.gmra.mrb[0].mxu0 %v446_v19  ;;  %4059 = vmatpush3.bf16.msra.mxu1 %v4459_v51 }
  0x28   : > { %3936 = vmatprep.mubr.bf16.mxu0 %v448_v21  ;;  %3953 = vmatpush3.bf16.msra.mxu0 %v4446_v39 }
  0x29   : > { %882 = vperm.xlu1 %4427, %v792_v30   ;;  %3954 = vmatprep.subr.bf16.mxu0 %v4447_v40 }
  0x2a   : > { %877 = vperm.xlu0 %4426, %v791_v32   ;;  %4060 = vmatprep.subr.bf16.mxu1 %v4461_v53 }
  0x2b   : > { %4061 = vmatpush3.bf16.msra.mxu1 %v4461_v53 }
  0x2c   : > { %3955 = vmatpush3.bf16.msra.mxu0 %v4447_v40  ;;  %4062 = vmatprep.subr.bf16.mxu1 %v4466_v55 }
  0x2d   : > { %892 = vperm.xlu1 %4427, %v794_v34   ;;  %3956 = vmatprep.subr.bf16.mxu0 %v4449_v42 }
  0x2e   : > { %887 = vperm.xlu0 %4426, %v793_v35  }
  0x2f   : > { %3937 = vmatmul.mubr.bf16.gmra.mrb[4].mxu0 %v450_v25  ;;  %4063 = vmatpush3.bf16.msra.mxu1 %v4466_v55 }
  0x30   : > { %3940 = vmatprep.mubr.bf16.mxu0 %v452_v27  ;;  %3957 = vmatpush3.bf16.msra.mxu0 %v4449_v42 }
  0x31   : > { %3958 = vmatprep.subr.bf16.mxu0 %v4451_v44  ;;  %4080 = vmatprep.subr.bf16.mxu1 %v4828_v56 }
  0x34   : > { %3959 = vmatpush3.bf16.msra.mxu0 %v4451_v44 }
  0x35   : > { %3960 = vmatprep.subr.bf16.mxu0 %v4453_v46 }
  0x37   : > { %3941 = vmatmul.mubr.bf16.gmra.mrb[8].mxu0 %v454_v31 }
  0x38   : > { %3944 = vmatprep.mubr.bf16.mxu0 %v456_v33  ;;  %3961 = vmatpush3.bf16.msra.mxu0 %v4453_v46 }
  0x39   : > { %3962 = vmatprep.subr.bf16.mxu0 %v4455_v48 }
  0x3c   : > { %3963 = vmatpush3.bf16.msra.mxu0 %v4455_v48 }
  0x3d   : > { %3964 = vmatprep.subr.bf16.mxu0 %v4458_v50 }
  0x3f   : > { %3945 = vmatmul.mubr.bf16.gmra.mrb[12].mxu0 %v458_v36 }
  0x40   : > { %3948 = vmatprep.mubr.bf16.mxu0 %v460_v37  ;;  %3965 = vmatpush3.bf16.msra.mxu0 %v4458_v50 }
  0x41   : > { %3966 = vmatprep.subr.bf16.mxu0 %v4460_v52 }
  0x44   : > { %3967 = vmatpush3.bf16.msra.mxu0 %v4460_v52 }
  0x45   : > { %3984 = vmatprep.subr.bf16.mxu0 %v4819_v54 }
  0x47   : > { %3949 = vmatmul.mubr.bf16.gmra.mrb[16].mxu0 %v4445_v38 }
  0x88   : > { %v808_v58 = vpop.permute.xlu1 %807 }
  0x89   : > { %v798_v57 = vpop.permute.xlu0 %797 }
  0x8c   : > { %v813_v60 = vpop.permute.xlu1 %812 }
  0x8d   : > { %v803_v59 = vpop.permute.xlu0 %802 }
  0x90   : > { %v823_v62 = vpop.permute.xlu1 %822 }
  0x91   : > { %v818_v61 = vpop.permute.xlu0 %817 }
  0x94   : > { %v833_v10 = vpop.permute.xlu1 %832 }
  0x95   : > { %v828_v6 = vpop.permute.xlu0 %827 }
  0x98   : > { %v4852_v25 = vpop.permute.xlu1 %842 }
  0x99   : > { %v4849_v20 = vpop.permute.xlu0 %837 }
  0x9c   : > { %v853_v43 = vpop.permute.xlu1 %852 }
  0x9d   : > { %v848_v41 = vpop.permute.xlu0 %847 }
  0xfa   : > { %v3934_v0 = vpop.f32.mrb[0].mxu0 }
  0xfb   : > { %v710_v2 = vmul.f32 %v3934_v0, %v4834_v63  ;;  %v622_v3 = vpop.f32.mrb[1].mxu0 }
  0xfc   : > { %v708_v4 = vmul.f32 %v4834_v63, %v622_v3  ;;  %v3935_v5 = vpop.f32.mrb[2].mxu0 }
  0xfd   : > { %v737_v7 = vadd.f32 %v4839_v1, %v710_v2  ;;  %v711_v8 = vmul.f32 %v3935_v5, %v4834_v63  ;;  %v625_v9 = vpop.f32.mrb[3].mxu0 }
  0xfe   : > { %v735_v11 = vadd.f32 %v4839_v1, %v708_v4  ;;  %v709_v12 = vmul.f32 %v4834_v63, %v625_v9  ;;  %v858_v4 = vpop.permute.xlu0 %857 }
  0xff   : > { %v757_v13 = vmax.f32 %v737_v7, 0.0  ;;  %v738_v14 = vadd.f32 %v4839_v1, %v711_v8  ;;  %v4874_v8 = vpop.permute.xlu1 %862 }
 0x100   : > { %v755_v15 = vmax.f32 %v735_v11, 0.0  ;;  %v736_v16 = vadd.f32 %v4839_v1, %v709_v12 }
 0x101   : > { %v758_v17 = vmax.f32 %v738_v14, 0.0  ;;  %v897_v21 = vmul.f32 %v808_v58, %v757_v13 }
 0x102   : > { %v756_v18 = vmax.f32 %v736_v16, 0.0  ;;  %v3938_v19 = vpop.f32.mrb[4].mxu0  ;;  %v895_v26 = vmul.f32 %v798_v57, %v755_v15 }
 0x103   : > { %v898_v22 = vmul.f32 %v813_v60, %v758_v17  ;;  %v714_v23 = vmul.f32 %v3938_v19, %v4834_v63  ;;  %v638_v24 = vpop.f32.mrb[5].mxu0 }
 0x104   : > { %v896_v27 = vmul.f32 %v803_v59, %v756_v18  ;;  %v712_v28 = vmul.f32 %v4834_v63, %v638_v24  ;;  %v3939_v29 = vpop.f32.mrb[6].mxu0 }
 0x105   : > { %v3664_v30 = vpack.c.bf16 %v898_v22, %v897_v21  ;;  %v741_v31 = vadd.f32 %v4839_v1, %v714_v23  ;;  %v715_v32 = vmul.f32 %v3939_v29, %v4834_v63  ;;  %v641_v33 = vpop.f32.mrb[7].mxu0 }
 0x106   : > { %v3659_v34 = vpack.c.bf16 %v896_v27, %v895_v26  ;;  %v739_v35 = vadd.f32 %v4839_v1, %v712_v28  ;;  %v713_v36 = vmul.f32 %v4834_v63, %v641_v33 }
 0x107   : > { %3726 = vst [vmem:[#allocation2 + $0x8] sm:$0xff] %v3664_v30   ;;  %v761_v37 = vmax.f32 %v741_v31, 0.0  ;;  %v742_v38 = vadd.f32 %v4839_v1, %v715_v32  ;;  %v868_v31 = vpop.permute.xlu0 %867 }
 0x108   : > { %3660 = vst [vmem:[#allocation2] sm:$0xff] %v3659_v34   ;;  %v759_v39 = vmax.f32 %v739_v35, 0.0  ;;  %v740_v40 = vadd.f32 %v4839_v1, %v713_v36 }
 0x109   : > { %v762_v42 = vmax.f32 %v742_v38, 0.0  ;;  %v901_v46 = vmul.f32 %v828_v6, %v761_v37  ;;  %v873_v37 = vpop.permute.xlu1 %872 }
 0x10a   : > { %v760_v44 = vmax.f32 %v740_v40, 0.0  ;;  %v3942_v45 = vpop.f32.mrb[8].mxu0  ;;  %v899_v50 = vmul.f32 %v818_v61, %v759_v39 }
 0x10b   : > { %v902_v47 = vmul.f32 %v833_v10, %v762_v42  ;;  %v718_v48 = vmul.f32 %v3942_v45, %v4834_v63  ;;  %v654_v49 = vpop.f32.mrb[9].mxu0 }
 0x10c   : > { %v900_v51 = vmul.f32 %v823_v62, %v760_v44  ;;  %v716_v52 = vmul.f32 %v4834_v63, %v654_v49  ;;  %v3943_v53 = vpop.f32.mrb[10].mxu0 }
 0x10d   : > { %v3674_v55 = vpack.c.bf16 %v902_v47, %v901_v46  ;;  %v745_v57 = vadd.f32 %v4839_v1, %v718_v48  ;;  %v719_v58 = vmul.f32 %v3943_v53, %v4834_v63  ;;  %v657_v59 = vpop.f32.mrb[11].mxu0 }
 0x10e   : > { %v3669_v60 = vpack.c.bf16 %v900_v51, %v899_v50  ;;  %v743_v0 = vadd.f32 %v4839_v1, %v716_v52  ;;  %v717_v2 = vmul.f32 %v4834_v63, %v657_v59  ;;  %v4867_v3 = vld [vmem:[#allocation2 + $0x8] sm:$0xff]  }
 0x10f   : > { %3728 = vst [vmem:[#allocation2 + $0x18] sm:$0xff] %v3674_v55   ;;  %v765_v61 = vmax.f32 %v745_v57, 0.0  ;;  %v746_v62 = vadd.f32 %v4839_v1, %v719_v58  ;;  %v1597_v5 = vld [vmem:[#allocation2] sm:$0xf]  ;;  %v4870_v6 = vld [vmem:[#allocation2 + $0x4] sm:$0xf]  ;;  %3968 = vmatprep.mubr.bf16.mxu0 %v4867_v3 }
 0x110   : > { %v4872_v7 = vld [vmem:[#allocation2 + $0x8] sm:$0xff]   ;;  %3727 = vst [vmem:[#allocation2 + $0x10] sm:$0xff] %v3669_v60   ;;  %v763_v9 = vmax.f32 %v743_v0, 0.0  ;;  %v744_v10 = vadd.f32 %v4839_v1, %v717_v2  ;;  %v3479_v11 = vcombine.low %v1597_v5, %v4870_v6  ;;  %v2314_v36 = vld [vmem:[#allocation2] sm:$0xe]  ;;  %v878_v2 = vpop.permute.xlu0 %877 }
 0x111   : > { %v766_v12 = vmax.f32 %v746_v62, 0.0  ;;  %v1687_v13 = vshll.u32 %v4872_v7, 16  ;;  %v905_v14 = vmul.f32 %v848_v41, %v765_v61  ;;  %v1691_v18 = vshrl.u32 %v4872_v7, 16 }
 0x112   : > { %v764_v15 = vmax.f32 %v744_v10, 0.0  ;;  %v3946_v16 = vpop.f32.mrb[12].mxu0  ;;  %v1682_v17 = vshll.u32 %v3479_v11, 16  ;;  %v903_v19 = vmul.f32 %v4849_v20, %v763_v9  ;;  %v1680_v24 = vshrl.u32 %v3479_v11, 16  ;;  %v4468_v20 = vld [vmem:[%s5381_s3 + $0x8] sm:$0xff]   ;;  %v883_v10 = vpop.permute.xlu1 %882 }
 0x113   : > { %v906_v21 = vmul.f32 %v853_v43, %v766_v12  ;;  %v722_v22 = vmul.f32 %v3946_v16, %v4834_v63  ;;  %v670_v23 = vpop.f32.mrb[13].mxu0  ;;  %v1689_v30 = vrot.slane %v1687_v13, 1  ;;  %v3564_v50 = vcombine.low %v2314_v36, %v4870_v6 }
 0x114   : > { %v904_v26 = vmul.f32 %v4852_v25, %v764_v15  ;;  %v720_v27 = vmul.f32 %v4834_v63, %v670_v23  ;;  %v3947_v28 = vpop.f32.mrb[14].mxu0  ;;  %v1684_v29 = vrot.slane %v1682_v17, 1  ;;  %v2337_v25 = vrot.slane %v4872_v7, 1 }
 0x115   : > { %v3684_v32 = vpack.c.bf16 %v906_v21, %v905_v14  ;;  %v749_v33 = vadd.f32 %v4839_v1, %v722_v22  ;;  %v723_v34 = vmul.f32 %v3947_v28, %v4834_v63  ;;  %v673_v35 = vpop.f32.mrb[15].mxu0  ;;  %v1693_v53 = vor.u32 %v1691_v18, %v1689_v30  ;;  %v4474_v21 = vld [vmem:[%s5381_s3 + $0x108] sm:$0xff]  }
 0x116   : > { %v3679_v38 = vpack.c.bf16 %v904_v26, %v903_v19  ;;  %v747_v39 = vadd.f32 %v4839_v1, %v720_v27  ;;  %v721_v40 = vmul.f32 %v4834_v63, %v673_v35  ;;  %v1685_v41 = vor.u32 %v1684_v29, %v1680_v24  ;;  %v4893_v42 = vld [vmem:[#allocation2 + $0x18] sm:$0xff]  }
 0x117   : > { %3730 = vst [vmem:[#allocation2 + $0x28] sm:$0xff] %v3684_v32   ;;  %v769_v43 = vmax.f32 %v749_v33, 0.0  ;;  %v750_v44 = vadd.f32 %v4839_v1, %v723_v34  ;;  %v4896_v45 = vld [vmem:[#allocation2 + $0x10] sm:$0xff]   ;;  %v4904_v55 = vld [vmem:[#allocation2 + $0x18] sm:$0xff]   ;;  %v2336_v14 = vrot.slane %v3564_v50, 1 }
 0x118   : > { %3729 = vst [vmem:[#allocation2 + $0x20] sm:$0xff] %v3679_v38   ;;  %v767_v46 = vmax.f32 %v747_v39, 0.0  ;;  %v748_v47 = vadd.f32 %v4839_v1, %v721_v40  ;;  %v1690_v48 = vsel %vm1678_vm0, %v1685_v41, %v1689_v30  ;;  %v4900_v49 = vld [vmem:[#allocation2 + $0x10] sm:$0xff]   ;;  %3969 = vmatmul.mubr.bf16.vlgmr.msra.gmra.mrb[20].mxu0 %v4896_v45  ;;  %v1703_v6 = vshll.u32 %v4904_v55, 16  ;;  %v4476_v27 = vld [vmem:[%s5381_s3 + $0x18] sm:$0xff]  }
 0x119   : > { %v909_v51 = vmul.f32 %v868_v31, %v769_v43  ;;  %v770_v52 = vmax.f32 %v750_v44, 0.0  ;;  %4064 = vmatprep.mubr.bf16.mxu1 %v1690_v48  ;;  %3972 = vmatprep.mubr.bf16.mxu0 %v4893_v42  ;;  %v1695_v60 = vshll.u32 %v4900_v49, 16  ;;  %v1699_v0 = vshrl.u32 %v4900_v49, 16 }
 0x11a   : > { %v907_v57 = vmul.f32 %v858_v4, %v767_v46  ;;  %v768_v58 = vmax.f32 %v748_v47, 0.0  ;;  %v3950_v59 = vpop.f32.mrb[16].mxu0  ;;  %3985 = vmatpush3.bf16.msra.mxu0 %v4819_v54  ;;  %v4473_v4 = vld [vmem:[%s5381_s3 + $0x10] sm:$0xff]   ;;  %v1707_v9 = vshrl.u32 %v4904_v55, 16  ;;  %v1705_v19 = vrot.slane %v1703_v6, 1 }
 0x11b   : > { %v910_v61 = vmul.f32 %v873_v37, %v770_v52  ;;  %v726_v62 = vmul.f32 %v3950_v59, %v4834_v63  ;;  %v686_v5 = vpop.f32.mrb[17].mxu0  ;;  %3986 = vmatprep.subr.bf16.mxu0 %v4468_v20  ;;  %v1697_v13 = vrot.slane %v1695_v60, 1  ;;  %v4945_v35 = vsel %vm2335_vm1, %v2336_v14, %v2337_v25  ;;  %v4481_v52 = vld [vmem:[%s5381_s3 + $0x20] sm:$0xff]   ;;  %v4482_v60 = vld [vmem:[%s5381_s3 + $0x118] sm:$0xff]  }
 0x11c   : > { %v908_v54 = vmul.f32 %v4874_v8, %v768_v58  ;;  %v724_v11 = vmul.f32 %v4834_v63, %v686_v5  ;;  %v3951_v12 = vpop.f32.mrb[18].mxu0  ;;  %v1709_v38 = vor.u32 %v1707_v9, %v1705_v19  ;;  %v2339_v48 = vrot.slane %v4900_v49, 1  ;;  %v4484_v5 = vld [vmem:[%s5381_s3 + $0x28] sm:$0xff]  }
 0x11d   : > { %v3694_v15 = vpack.c.bf16 %v910_v61, %v909_v51  ;;  %v753_v16 = vadd.f32 %v4839_v1, %v726_v62  ;;  %v727_v17 = vmul.f32 %v3951_v12, %v4834_v63  ;;  %v689_v18 = vpop.f32.mrb[19].mxu0  ;;  %v4926_v24 = vsel %vm1678_vm0, %v1693_v53, %v1697_v13 }
 0x11e   : > { %v3689_v22 = vpack.c.bf16 %v908_v54, %v907_v57  ;;  %v751_v23 = vadd.f32 %v4839_v1, %v724_v11  ;;  %v725_v8 = vmul.f32 %v4834_v63, %v689_v18  ;;  %3987 = vmatpush3.bf16.msra.mxu0 %v4468_v20  ;;  %v4928_v26 = vld [vmem:[#allocation2 + $0x28] sm:$0xff]   ;;  %4065 = vmatmul.mubr.bf16.vlgmr.msra.gmra.mrb[0].mxu1 %v4926_v24  ;;  %v4477_v63 = vld [vmem:[%s5381_s3 + $0x110] sm:$0xff]   ;;  %v888_v20 = vpop.permute.xlu0 %887  ;;  %v2341_v53 = vrot.slane %v4904_v55, 1 }
 0x11f   : > { %3732 = vst [vmem:[#allocation2 + $0x38] sm:$0xff] %v3694_v15   ;;  %v773_v28 = vmax.f32 %v753_v16, 0.0  ;;  %v754_v29 = vadd.f32 %v4839_v1, %v727_v17  ;;  %v1701_v30 = vor.u32 %v1699_v0, %v1697_v13  ;;  %v4935_v31 = vld [vmem:[#allocation2 + $0x20] sm:$0xff]   ;;  %3988 = vmatprep.subr.bf16.mxu0 %v4473_v4  ;;  %4081 = vmatpush3.bf16.msra.mxu1 %v4828_v56  ;;  %v4951_v39 = vld [vmem:[#allocation2 + $0x28] sm:$0xff]  }
 0x120   : > { %3731 = vst [vmem:[#allocation2 + $0x30] sm:$0xff] %v3689_v22   ;;  %v771_v32 = vmax.f32 %v751_v23, 0.0  ;;  %v752_v33 = vadd.f32 %v4839_v1, %v725_v8  ;;  %v4478_v34 = vld [vmem:[#allocation2 + $0x20] sm:$0xff]   ;;  %3973 = vmatmul.mubr.bf16.gmra.mrb[24].mxu0 %v4935_v31  ;;  %4082 = vmatprep.subr.bf16.mxu1 %v4474_v21  ;;  %v893_v1 = vpop.permute.xlu1 %892  ;;  %v1719_v47 = vshll.u32 %v4951_v39, 16  ;;  %v4967_v49 = vsel %vm2335_vm1, %v2337_v25, %v2339_v48  ;;  %v4489_v22 = vld [vmem:[%s5381_s3 + $0x30] sm:$0xff]  }
 0x121   : > { %v774_v36 = vmax.f32 %v754_v29, 0.0  ;;  %v4948_v37 = vsel %vm1678_vm0, %v1701_v30, %v1705_v19  ;;  %v913_v40 = vmul.f32 %v888_v20, %v773_v28  ;;  %3976 = vmatprep.mubr.bf16.mxu0 %v4928_v26  ;;  %v1711_v43 = vshll.u32 %v4478_v34, 16  ;;  %v4485_v25 = vld [vmem:[%s5381_s3 + $0x120] sm:$0xff]   ;;  %v5000_v16 = vld [vmem:[#allocation2 + $0x50] ss:$0 sps:$4 sm:$0x11]  }
 0x122   : > { %v911_v56 = vmul.f32 %v878_v2, %v771_v32  ;;  %v772_v41 = vmax.f32 %v752_v33, 0.0  ;;  %4068 = vmatprep.mubr.bf16.mxu1 %v4948_v37  ;;  %3989 = vmatpush3.bf16.msra.mxu0 %v4473_v4  ;;  %v1715_v46 = vshrl.u32 %v4478_v34, 16  ;;  %v2343_v57 = vrot.slane %v4478_v34, 1  ;;  %v4492_v32 = vld [vmem:[%s5381_s3 + $0x38] sm:$0xff]  }
 0x123   : > { %v914_v44 = vmul.f32 %v893_v1, %v774_v36  ;;  %4083 = vmatpush3.bf16.msra.mxu1 %v4474_v21  ;;  %3990 = vmatprep.subr.bf16.mxu0 %v4476_v27  ;;  %v1713_v51 = vrot.slane %v1711_v43, 1  ;;  %v1721_v59 = vrot.slane %v1719_v47, 1  ;;  %v2345_v0 = vrot.slane %v4951_v39, 1 }
 0x124   : > { %v912_v50 = vmul.f32 %v883_v10, %v772_v41  ;;  %4084 = vmatprep.subr.bf16.mxu1 %v4477_v63  ;;  %v4979_v6 = vsel %vm2335_vm1, %v2339_v48, %v2341_v53  ;;  %v4988_v4 = vsel %vm2335_vm1, %v2341_v53, %v2343_v57  ;;  %v1723_v12 = vshrl.u32 %v4951_v39, 16  ;;  %v4493_v41 = vld [vmem:[%s5381_s3 + $0x130] sm:$0xff]  }
 0x125   : > { %v3704_v58 = vpack.c.bf16 %v914_v44, %v913_v40  ;;  %v4971_v61 = vsel %vm1678_vm0, %v1709_v38, %v1713_v51  ;;  %v1717_v55 = vor.u32 %v1715_v46, %v1713_v51  ;;  %v4991_v9 = vsel %vm2335_vm1, %v2343_v57, %v2345_v0  ;;  %v4496_v51 = vld [vmem:[%s5381_s3 + $0x180] sm:$0xff]  }
 0x126   : > { %v3699_v2 = vpack.c.bf16 %v912_v50, %v911_v56  ;;  %v4973_v62 = vld [vmem:[#allocation2 + $0x38] sm:$0xff]   ;;  %3991 = vmatpush3.bf16.msra.mxu0 %v4476_v27  ;;  %4069 = vmatmul.mubr.bf16.gmra.mrb[4].mxu1 %v4971_v61  ;;  %v1725_v18 = vor.u32 %v1723_v12, %v1721_v59  ;;  %v4490_v27 = vld [vmem:[%s5381_s3 + $0x128] sm:$0xff]   ;;  %v2725_v39 = vrot.slane %v5000_v16, 1  ;;  %v4500_v12 = vld [vmem:[%s5381_s3 + $0x190] sm:$0xff]  }
 0x127   : > { %3734 = vst [vmem:[#allocation2 + $0x48] sm:$0xff] %v3704_v58   ;;  %v4982_v7 = vld [vmem:[#allocation2 + $0x30] sm:$0xff]   ;;  %4085 = vmatpush3.bf16.msra.mxu1 %v4477_v63  ;;  %v4994_v10 = vsel %vm1678_vm0, %v1717_v55, %v1721_v59  ;;  %3992 = vmatprep.subr.bf16.mxu0 %v4481_v52  ;;  %v4487_v11 = vld [vmem:[#allocation2 + $0x38] sm:$0xff]   ;;  %v4491_v63 = vld [vmem:[#allocation2] sm:$0xff]  }
 0x128   : > { %3733 = vst [vmem:[#allocation2 + $0x40] sm:$0xff] %v3699_v2   ;;  %v4486_v54 = vld [vmem:[#allocation2 + $0x30] sm:$0xff]   ;;  %4072 = vmatprep.mubr.bf16.mxu1 %v4994_v10  ;;  %3977 = vmatmul.mubr.bf16.gmra.mrb[28].mxu0 %v4982_v7  ;;  %v1735_v15 = vshll.u32 %v4487_v11, 16  ;;  %v2349_v17 = vrot.slane %v4487_v11, 1  ;;  %v1739_v48 = vshrl.u32 %v4487_v11, 16  ;;  %v4499_v11 = vld [vmem:[%s5381_s3 + $0x1c0] sm:$0xff]  }
 0x129   : > { %4086 = vmatprep.subr.bf16.mxu1 %v4482_v60  ;;  %3980 = vmatprep.mubr.bf16.mxu0 %v4973_v62  ;;  %v1727_v13 = vshll.u32 %v4486_v54, 16  ;;  %v2347_v14 = vrot.slane %v4486_v54, 1  ;;  %v1731_v21 = vshrl.u32 %v4486_v54, 16  ;;  %v4498_v54 = vld [vmem:[%s5381_s3 + $0x188] sm:$0xff]  }
 0x12a   : > { %3993 = vmatpush3.bf16.msra.mxu0 %v4481_v52  ;;  %v1737_v8 = vrot.slane %v1735_v15, 1  ;;  %v4505_v15 = vld [vmem:[%s5381_s3 + $0x1d8] sm:$0xff]  }
 0x12b   : > { %4087 = vmatpush3.bf16.msra.mxu1 %v4482_v60  ;;  %3994 = vmatprep.subr.bf16.mxu0 %v4484_v5  ;;  %v1729_v19 = vrot.slane %v1727_v13, 1  ;;  %v5006_v23 = vsel %vm2335_vm1, %v2345_v0, %v2347_v14  ;;  %v5012_v28 = vsel %vm2335_vm1, %v2347_v14, %v2349_v17  ;;  %v4497_v60 = vld [vmem:[%s5381_s3 + $0x138] sm:$0xff]   ;;  %v4503_v13 = vld [vmem:[%s5381_s3 + $0x1d0] sm:$0xff]   ;;  %v4504_v14 = vld [vmem:[%s5381_s3 + $0x1a0] sm:$0xff]  }
 0x12c   : > { %4088 = vmatprep.subr.bf16.mxu1 %v4485_v25  ;;  %v1741_v58 = vor.u32 %v1739_v48, %v1737_v8  ;;  %v4530_v48 = vld [vmem:[%s5381_s3 + $0x160] sm:$0xff]  }
 0x12d   : > { %v5015_v29 = vsel %vm1678_vm0, %v1725_v18, %v1729_v19  ;;  %v1733_v30 = vor.u32 %v1731_v21, %v1729_v19  ;;  %v4507_v19 = vld [vmem:[%s5381_s3 + $0x1e0] sm:$0xff]  }
 0x12e   : > { %v1615_v33 = vld [vmem:[#allocation2 + $0x48] sm:$0xf]  ;;  %v1616_v34 = vld [vmem:[#allocation2 + $0x4c] sm:$0xf]  ;;  %3995 = vmatpush3.bf16.msra.mxu0 %v4484_v5  ;;  %4073 = vmatmul.mubr.bf16.gmra.mrb[8].mxu1 %v5015_v29 }
 0x12f   : > { %v5021_v20 = vld [vmem:[#allocation2 + $0x40] sm:$0xff]   ;;  %v5023_v36 = vcombine.low %v1615_v33, %v1615_v33  ;;  %v5025_v38 = vcombine.low %v1615_v33, %v1616_v34  ;;  %4089 = vmatpush3.bf16.msra.mxu1 %v4485_v25  ;;  %v5029_v1 = vsel %vm1678_vm0, %v1733_v30, %v1737_v8  ;;  %3996 = vmatprep.subr.bf16.mxu0 %v4489_v22  ;;  %v4509_v8 = vld [vmem:[%s5381_s3 + $0x1e8] sm:$0xff]   ;;  %v4510_v30 = vld [vmem:[%s5381_s3 + $0x1b8] sm:$0xff]  }
 0x130   : > { %v1613_v40 = vld [vmem:[#allocation2 + $0x40] sm:$0xf]  ;;  %v1614_v56 = vld [vmem:[#allocation2 + $0x44] sm:$0xf]  ;;  %4076 = vmatprep.mubr.bf16.mxu1 %v5029_v1  ;;  %3981 = vmatmul.mubr.bf16.gmra.mrb[32].mxu0 %v5021_v20  ;;  %v4511_v33 = vld [vmem:[%s5381_s3 + $0x1f0] sm:$0xff]  }
 0x131   : > { %v3487_v43 = vcombine.low %v1613_v40, %v1613_v40  ;;  %v5036_v44 = vcombine.low %v1613_v40, %v1614_v56  ;;  %4090 = vmatprep.subr.bf16.mxu1 %v4490_v27  ;;  %4000 = vmatprep.mubr.bf16.mxu0 %v4491_v63  ;;  %v2541_v46 = vrot.slane %v5023_v36, 1  ;;  %v2723_v47 = vrot.slane %v5025_v38, 1  ;;  %v4514_v40 = vld [vmem:[%s5381_s3 + $0x1f8] sm:$0xff]   ;;  %v4516_v56 = vld [vmem:[%s5381_s3 + $0x88] sm:$0xff]  }
 0x132   : > { %3997 = vmatpush3.bf16.msra.mxu0 %v4489_v22  ;;  %v4508_v22 = vld [vmem:[%s5381_s3 + $0x1b0] sm:$0xff]  }
 0x133   : > { %v1743_v50 = vshll.u32 %v3487_v43, 16  ;;  %4091 = vmatpush3.bf16.msra.mxu1 %v4490_v27  ;;  %3998 = vmatprep.subr.bf16.mxu0 %v4492_v32  ;;  %v2351_v52 = vrot.slane %v3487_v43, 1  ;;  %v2539_v53 = vrot.slane %v5036_v44, 1  ;;  %v5045_v57 = vsel %vm2335_vm1, %v2723_v47, %v2725_v39 }
 0x134   : > { %4092 = vmatprep.subr.bf16.mxu1 %v4493_v41  ;;  %v1940_v18 = vshll.u32 %v5036_v44, 16  ;;  %v1944_v63 = vshrl.u32 %v5036_v44, 16 }
 0x135   : > { %v1745_v59 = vrot.slane %v1743_v50, 1  ;;  %v5051_v0 = vsel %vm2335_vm1, %v2349_v17, %v2351_v52  ;;  %v5054_v2 = vsel %vm2335_vm1, %v2349_v17, %v2539_v53  ;;  %v5057_v55 = vsel %vm2335_vm1, %v2539_v53, %v2541_v46  ;;  %v4506_v17 = vld [vmem:[%s5381_s3 + $0x1a8] sm:$0xff]   ;;  %v4533_v52 = vld [vmem:[%s5381_s3 + $0x178] sm:$0xff]  }
 0x136   : > { %3999 = vmatpush3.bf16.msra.mxu0 %v4492_v32  ;;  %v5061_v25 = vsel %vm2335_vm1, %v2539_v53, %v2723_v47  ;;  %v1942_v21 = vrot.slane %v1940_v18, 1  ;;  %v1948_v32 = vshll.u32 %v5023_v36, 16  ;;  %v4527_v46 = vld [vmem:[%s5381_s3 + $0x148] sm:$0xff]   ;;  %v4529_v47 = vld [vmem:[%s5381_s3 + $0x158] sm:$0xff]   ;;  %v4534_v53 = vld [vmem:[%s5381_s3 + $0x200] sm:$0xff]  }
 0x137   : > { %v1746_v5 = vsel %vm1678_vm0, %v1741_v58, %v1745_v59  ;;  %4016 = vmatprep.subr.bf16.mxu0 %v4496_v51  ;;  %4093 = vmatpush3.bf16.msra.mxu1 %v4493_v41  ;;  %v4531_v50 = vld [vmem:[%s5381_s3 + $0x168] sm:$0xff]   ;;  %v4537_v59 = vld [vmem:[%s5381_s3 + $0x218] sm:$0xff]  }
 0x138   : > { %4077 = vmatmul.mubr.bf16.gmra.mrb[12].mxu1 %v1746_v5  ;;  %4094 = vmatprep.subr.bf16.mxu1 %v4497_v60  ;;  %v1943_v27 = vsel %vm1678_vm0, %v1741_v58, %v1942_v21  ;;  %v1946_v34 = vor.u32 %v1944_v63, %v1942_v21  ;;  %v1950_v39 = vrot.slane %v1948_v32, 1  ;;  %v4535_v58 = vld [vmem:[%s5381_s3 + $0x208] sm:$0xff]   ;;  %v4540_v5 = vld [vmem:[%s5381_s3 + $0x230] sm:$0xff]   ;;  %v5274_v32 = vld [vmem:[%s5385_s7] ss:$0 sm:$0xff] }
 0x139   : > { %4096 = vmatprep.mubr.bf16.mxu1 %v4926_v24  ;;  %4001 = vmatmul.mubr.bf16.vlgmr.msra.gmra.mrb[20].mxu0 %v4867_v3  ;;  %v4501_v24 = vld [vmem:[%s5381_s3 + $0x1c8] sm:$0xff]   ;;  %v4502_v3 = vld [vmem:[%s5381_s3 + $0x198] sm:$0xff]  }
 0x13a   : > { %4004 = vmatprep.mubr.bf16.mxu0 %v4896_v45  ;;  %4017 = vmatpush3.bf16.msra.mxu0 %v4496_v51  ;;  %v1951_v36 = vsel %vm1678_vm0, %v1946_v34, %v1950_v39  ;;  %v4532_v51 = vld [vmem:[%s5381_s3 + $0x170] sm:$0xff]   ;;  %v5279_v39 = vld [vmem:[%s5386_s8] ss:$0 sm:$0xff] }
 0x13b   : > { %4018 = vmatprep.subr.bf16.mxu0 %v4498_v54  ;;  %4095 = vmatpush3.bf16.msra.mxu1 %v4497_v60  ;;  %v4538_v60 = vld [vmem:[%s5381_s3 + $0x220] sm:$0xff]  }
 0x13c   : > { %4112 = vmatprep.subr.bf16.mxu1 %v4499_v11 }
 0x13e   : > { %4019 = vmatpush3.bf16.msra.mxu0 %v4498_v54  ;;  %v4541_v54 = vld [vmem:[%s5381_s3 + $0x238] sm:$0xff]  }
 0x13f   : > { %4020 = vmatprep.subr.bf16.mxu0 %v4500_v12 }
 0x140   : > { %4097 = vmatmul.mubr.bf16.vlgmr.msra.gmra.mrb[0].mxu1 %v4948_v37 }
 0x141   : > { %4113 = vmatpush3.bf16.msra.mxu1 %v4499_v11  ;;  %4100 = vmatprep.mubr.bf16.mxu1 %v4971_v61  ;;  %v4542_v11 = vld [vmem:[%s5382_s4] sm:$0xff]  }
 0x142   : > { %4005 = vmatmul.mubr.bf16.gmra.mrb[24].mxu0 %v4893_v42  ;;  %4114 = vmatprep.subr.bf16.mxu1 %v4501_v24 }
 0x143   : > { %4008 = vmatprep.mubr.bf16.mxu0 %v4935_v31  ;;  %4021 = vmatpush3.bf16.msra.mxu0 %v4500_v12  ;;  %v4543_v12 = vld [vmem:[%s5382_s4 + $0x8] sm:$0xff]  }
 0x144   : > { %4022 = vmatprep.subr.bf16.mxu0 %v4502_v3 }
 0x145   : > { %4115 = vmatpush3.bf16.msra.mxu1 %v4501_v24 }
 0x146   : > { %4116 = vmatprep.subr.bf16.mxu1 %v4503_v13 }
 0x147   : > { %4023 = vmatpush3.bf16.msra.mxu0 %v4502_v3 }
 0x148   : > { %4101 = vmatmul.mubr.bf16.gmra.mrb[4].mxu1 %v4994_v10  ;;  %4024 = vmatprep.subr.bf16.mxu0 %v4504_v14 }
 0x149   : > { %4117 = vmatpush3.bf16.msra.mxu1 %v4503_v13  ;;  %4104 = vmatprep.mubr.bf16.mxu1 %v5015_v29 }
 0x14a   : > { %4009 = vmatmul.mubr.bf16.gmra.mrb[28].mxu0 %v4928_v26  ;;  %4118 = vmatprep.subr.bf16.mxu1 %v4505_v15 }
 0x14b   : > { %4012 = vmatprep.mubr.bf16.mxu0 %v4982_v7  ;;  %4025 = vmatpush3.bf16.msra.mxu0 %v4504_v14 }
 0x14c   : > { %4026 = vmatprep.subr.bf16.mxu0 %v4506_v17 }
 0x14d   : > { %4119 = vmatpush3.bf16.msra.mxu1 %v4505_v15 }
 0x14e   : > { %4120 = vmatprep.subr.bf16.mxu1 %v4507_v19 }
 0x14f   : > { %4027 = vmatpush3.bf16.msra.mxu0 %v4506_v17 }
 0x150   : > { %4105 = vmatmul.mubr.bf16.gmra.mrb[8].mxu1 %v5029_v1  ;;  %4028 = vmatprep.subr.bf16.mxu0 %v4508_v22 }
 0x151   : > { %4121 = vmatpush3.bf16.msra.mxu1 %v4507_v19  ;;  %4108 = vmatprep.mubr.bf16.mxu1 %v1943_v27 }
 0x152   : > { %4013 = vmatmul.mubr.bf16.gmra.mrb[32].mxu0 %v4973_v62  ;;  %4122 = vmatprep.subr.bf16.mxu1 %v4509_v8 }
 0x153   : > { %4029 = vmatpush3.bf16.msra.mxu0 %v4508_v22  ;;  %4032 = vmatprep.mubr.bf16.mxu0 %v4896_v45  ;;  %v4515_v45 = vld [vmem:[%s5381_s3 + $0x80] sm:$0xff]  }
 0x154   : > { %4030 = vmatprep.subr.bf16.mxu0 %v4510_v30 }
 0x155   : > { %4123 = vmatpush3.bf16.msra.mxu1 %v4509_v8 }
 0x156   : > { %4124 = vmatprep.subr.bf16.mxu1 %v4511_v33 }
 0x157   : > { %4031 = vmatpush3.bf16.msra.mxu0 %v4510_v30 }
 0x158   : > { %4109 = vmatmul.mubr.bf16.gmra.mrb[12].mxu1 %v1951_v36  ;;  %4240 = vmatprep.subr.bf16.mxu0 %v4542_v11 }
 0x159   : > { %4125 = vmatpush3.bf16.msra.mxu1 %v4511_v33  ;;  %4128 = vmatprep.mubr.bf16.mxu1 %v4948_v37  ;;  %v2139_v37 = vshll.u32 %v5025_v38, 16 }
 0x15a   : > { %4033 = vmatmul.mubr.bf16.vlgmr.msra.gmra.mrb[20].mxu0 %v4893_v42  ;;  %4126 = vmatprep.subr.bf16.mxu1 %v4514_v40  ;;  %v4517_v42 = vld [vmem:[%s5381_s3 + $0x90] sm:$0xff]  }
 0x15b   : > { %4036 = vmatprep.mubr.bf16.mxu0 %v4935_v31  ;;  %v4518_v31 = vld [vmem:[%s5381_s3 + $0x98] sm:$0xff]   ;;  %4241 = vmatpush3.bf16.msra.mxu0 %v4542_v11 }
 0x15c   : > { %4242 = vmatprep.subr.bf16.mxu0 %v4543_v12 }
 0x15d   : > { %4127 = vmatpush3.bf16.msra.mxu1 %v4514_v40 }
 0x15e   : > { %4144 = vmatprep.subr.bf16.mxu1 %v4515_v45 }
 0x15f   : > { %4243 = vmatpush3.bf16.msra.mxu0 %v4543_v12 }
 0x160   : > { %4129 = vmatmul.mubr.bf16.vlgmr.msra.gmra.mrb[0].mxu1 %v4971_v61  ;;  %v2141_v61 = vrot.slane %v2139_v37, 1 }
 0x161   : > { %4145 = vmatpush3.bf16.msra.mxu1 %v4515_v45  ;;  %4132 = vmatprep.mubr.bf16.mxu1 %v4994_v10  ;;  %v2147_v10 = vshll.u32 %v5000_v16, 16  ;;  %v4525_v16 = vld [vmem:[%s5381_s3 + $0xb8] sm:$0xff]  }
 0x162   : > { %4037 = vmatmul.mubr.bf16.gmra.mrb[24].mxu0 %v4928_v26  ;;  %4146 = vmatprep.subr.bf16.mxu1 %v4516_v56  ;;  %v4519_v26 = vld [vmem:[%s5381_s3 + $0xa0] sm:$0xff]  }
 0x163   : > { %4040 = vmatprep.mubr.bf16.mxu0 %v4982_v7  ;;  %v4521_v7 = vld [vmem:[%s5381_s3 + $0xa8] sm:$0xff]   ;;  %v2149_v43 = vrot.slane %v2147_v10, 1 }
 0x165   : > { %4147 = vmatpush3.bf16.msra.mxu1 %v4516_v56 }
 0x166   : > { %4148 = vmatprep.subr.bf16.mxu1 %v4517_v42 }
 0x168   : > { %4133 = vmatmul.mubr.bf16.gmra.mrb[4].mxu1 %v5015_v29  ;;  %v4520_v29 = vld [vmem:[#allocation2 + $0x48] sm:$0xff]  }
 0x169   : > { %4149 = vmatpush3.bf16.msra.mxu1 %v4517_v42  ;;  %4136 = vmatprep.mubr.bf16.mxu1 %v5029_v1  ;;  %v2143_v1 = vshrl.u32 %v5025_v38, 16  ;;  %v4526_v38 = vld [vmem:[%s5381_s3 + $0x140] sm:$0xff]  }
 0x16a   : > { %4041 = vmatmul.mubr.bf16.gmra.mrb[28].mxu0 %v4973_v62  ;;  %4150 = vmatprep.subr.bf16.mxu1 %v4518_v31  ;;  %v2142_v62 = vsel %vm1678_vm0, %v1946_v34, %v2141_v61 }
 0x16b   : > { %4044 = vmatprep.mubr.bf16.mxu0 %v5021_v20  ;;  %v4522_v20 = vld [vmem:[%s5381_s3 + $0xb0] sm:$0xff]   ;;  %v2145_v41 = vor.u32 %v2143_v1, %v2141_v61 }
 0x16d   : > { %4151 = vmatpush3.bf16.msra.mxu1 %v4518_v31  ;;  %v2150_v44 = vsel %vm1678_vm0, %v2145_v41, %v2149_v43 }
 0x16e   : > { %4152 = vmatprep.subr.bf16.mxu1 %v4519_v26 }
 0x170   : > { %4137 = vmatmul.mubr.bf16.gmra.mrb[8].mxu1 %v1943_v27 }
 0x171   : > { %4153 = vmatpush3.bf16.msra.mxu1 %v4519_v26  ;;  %4140 = vmatprep.mubr.bf16.mxu1 %v2142_v62 }
 0x172   : > { %4045 = vmatmul.mubr.bf16.gmra.mrb[32].mxu0 %v4520_v29  ;;  %4154 = vmatprep.subr.bf16.mxu1 %v4521_v7 }
 0x175   : > { %4155 = vmatpush3.bf16.msra.mxu1 %v4521_v7 }
 0x176   : > { %4156 = vmatprep.subr.bf16.mxu1 %v4522_v20 }
 0x178   : > { %4141 = vmatmul.mubr.bf16.gmra.mrb[12].mxu1 %v2150_v44 }
 0x179   : > { %4157 = vmatpush3.bf16.msra.mxu1 %v4522_v20  ;;  %4160 = vmatprep.mubr.bf16.mxu1 %v4945_v35  ;;  %v4528_v35 = vld [vmem:[%s5381_s3 + $0x150] sm:$0xff]  }
 0x17a   : > { %4158 = vmatprep.subr.bf16.mxu1 %v4525_v16 }
 0x17d   : > { %4159 = vmatpush3.bf16.msra.mxu1 %v4525_v16 }
 0x17e   : > { %4176 = vmatprep.subr.bf16.mxu1 %v4526_v38 }
 0x180   : > { %4161 = vmatmul.mubr.bf16.vlgmr.msra.gmra.mrb[0].mxu1 %v4967_v49 }
 0x181   : > { %4177 = vmatpush3.bf16.msra.mxu1 %v4526_v38  ;;  %4164 = vmatprep.mubr.bf16.mxu1 %v4979_v6 }
 0x182   : > { %4178 = vmatprep.subr.bf16.mxu1 %v4527_v46 }
 0x185   : > { %4179 = vmatpush3.bf16.msra.mxu1 %v4527_v46 }
 0x186   : > { %4180 = vmatprep.subr.bf16.mxu1 %v4528_v35 }
 0x188   : > { %4165 = vmatmul.mubr.bf16.gmra.mrb[4].mxu1 %v4988_v4 }
 0x189   : > { %4181 = vmatpush3.bf16.msra.mxu1 %v4528_v35  ;;  %4168 = vmatprep.mubr.bf16.mxu1 %v4991_v9 }
 0x18a   : > { %4182 = vmatprep.subr.bf16.mxu1 %v4529_v47 }
 0x18d   : > { %4183 = vmatpush3.bf16.msra.mxu1 %v4529_v47 }
 0x18e   : > { %4184 = vmatprep.subr.bf16.mxu1 %v4530_v48 }
 0x190   : > { %4169 = vmatmul.mubr.bf16.gmra.mrb[8].mxu1 %v5006_v23 }
 0x191   : > { %4185 = vmatpush3.bf16.msra.mxu1 %v4530_v48  ;;  %4172 = vmatprep.mubr.bf16.mxu1 %v5012_v28 }
 0x192   : > { %4186 = vmatprep.subr.bf16.mxu1 %v4531_v50 }
 0x195   : > { %4187 = vmatpush3.bf16.msra.mxu1 %v4531_v50 }
 0x196   : > { %4188 = vmatprep.subr.bf16.mxu1 %v4532_v51 }
 0x198   : > { %4173 = vmatmul.mubr.bf16.gmra.mrb[12].mxu1 %v5051_v0  ;;  %v4539_v0 = vld [vmem:[%s5381_s3 + $0x228] sm:$0xff]  }
 0x199   : > { %4189 = vmatpush3.bf16.msra.mxu1 %v4532_v51  ;;  %4192 = vmatprep.mubr.bf16.mxu1 %v4967_v49  ;;  %v4536_v49 = vld [vmem:[%s5381_s3 + $0x210] sm:$0xff]  }
 0x19a   : > { %4190 = vmatprep.subr.bf16.mxu1 %v4533_v52 }
 0x19d   : > { %4191 = vmatpush3.bf16.msra.mxu1 %v4533_v52 }
 0x19e   : > { %4208 = vmatprep.subr.bf16.mxu1 %v4534_v53 }
 0x1a0   : > { %4193 = vmatmul.mubr.bf16.vlgmr.msra.gmra.mrb[0].mxu1 %v4979_v6 }
 0x1a1   : > { %4209 = vmatpush3.bf16.msra.mxu1 %v4534_v53  ;;  %4196 = vmatprep.mubr.bf16.mxu1 %v4988_v4 }
 0x1a2   : > { %4210 = vmatprep.subr.bf16.mxu1 %v4535_v58 }
 0x1a5   : > { %4211 = vmatpush3.bf16.msra.mxu1 %v4535_v58 }
 0x1a6   : > { %4212 = vmatprep.subr.bf16.mxu1 %v4536_v49 }
 0x1a8   : > { %4197 = vmatmul.mubr.bf16.gmra.mrb[4].mxu1 %v4991_v9 }
 0x1a9   : > { %4213 = vmatpush3.bf16.msra.mxu1 %v4536_v49  ;;  %4200 = vmatprep.mubr.bf16.mxu1 %v5006_v23 }
 0x1aa   : > { %4214 = vmatprep.subr.bf16.mxu1 %v4537_v59 }
 0x1ad   : > { %4215 = vmatpush3.bf16.msra.mxu1 %v4537_v59 }
 0x1ae   : > { %4216 = vmatprep.subr.bf16.mxu1 %v4538_v60 }
 0x1b0   : > { %4201 = vmatmul.mubr.bf16.gmra.mrb[8].mxu1 %v5012_v28 }
 0x1b1   : > { %4217 = vmatpush3.bf16.msra.mxu1 %v4538_v60  ;;  %4204 = vmatprep.mubr.bf16.mxu1 %v5054_v2 }
 0x1b2   : > { %4218 = vmatprep.subr.bf16.mxu1 %v4539_v0 }
 0x1b5   : > { %4219 = vmatpush3.bf16.msra.mxu1 %v4539_v0 }
 0x1b6   : > { %4220 = vmatprep.subr.bf16.mxu1 %v4540_v5 }
 0x1b8   : > { %4205 = vmatmul.mubr.bf16.gmra.mrb[12].mxu1 %v5057_v55 }
 0x1b9   : > { %4221 = vmatpush3.bf16.msra.mxu1 %v4540_v5  ;;  %4224 = vmatprep.mubr.bf16.mxu1 %v4979_v6  ;;  %v4544_v6 = vld [vmem:[%s5382_s4 + $0x10] sm:$0xff]  }
 0x1ba   : > { %4222 = vmatprep.subr.bf16.mxu1 %v4541_v54  ;;  %4244 = vmatprep.subr.bf16.mxu0 %v4544_v6 }
 0x1bb   : > { %4245 = vmatpush3.bf16.msra.mxu0 %v4544_v6 }
 0x1bd   : > { %4223 = vmatpush3.bf16.msra.mxu1 %v4541_v54 }
 0x1c0   : > { %4225 = vmatmul.mubr.bf16.vlgmr.msra.gmra.mrb[0].mxu1 %v4988_v4  ;;  %v4545_v4 = vld [vmem:[%s5382_s4 + $0x18] sm:$0xff]  }
 0x1c1   : > { %4228 = vmatprep.mubr.bf16.mxu1 %v4991_v9  ;;  %4246 = vmatprep.subr.bf16.mxu0 %v4545_v4  ;;  %v4546_v9 = vld [vmem:[%s5382_s4 + $0x20] sm:$0xff]  }
 0x1c2   : > { %4247 = vmatpush3.bf16.msra.mxu0 %v4545_v4 }
 0x1c3   : > { %4248 = vmatprep.subr.bf16.mxu0 %v4546_v9 }
 0x1c6   : > { %4249 = vmatpush3.bf16.msra.mxu0 %v4546_v9 }
 0x1c8   : > { %4229 = vmatmul.mubr.bf16.gmra.mrb[4].mxu1 %v5006_v23  ;;  %v4547_v23 = vld [vmem:[%s5382_s4 + $0x28] sm:$0xff]  }
 0x1c9   : > { %4232 = vmatprep.mubr.bf16.mxu1 %v5012_v28  ;;  %v4548_v28 = vld [vmem:[%s5382_s4 + $0x30] sm:$0xff]   ;;  %4250 = vmatprep.subr.bf16.mxu0 %v4547_v23 }
 0x1ca   : > { %4251 = vmatpush3.bf16.msra.mxu0 %v4547_v23 }
 0x1cb   : > { %4252 = vmatprep.subr.bf16.mxu0 %v4548_v28 }
 0x1ce   : > { %4253 = vmatpush3.bf16.msra.mxu0 %v4548_v28 }
 0x1d0   : > { %4233 = vmatmul.mubr.bf16.gmra.mrb[8].mxu1 %v5054_v2  ;;  %v4549_v2 = vld [vmem:[%s5382_s4 + $0x38] sm:$0xff]  }
 0x1d1   : > { %4236 = vmatprep.mubr.bf16.mxu1 %v5061_v25  ;;  %4254 = vmatprep.subr.bf16.mxu0 %v4549_v2 }
 0x1d2   : > { %4255 = vmatpush3.bf16.msra.mxu0 %v4549_v2 }
 0x1d8   : > { %4237 = vmatmul.mubr.bf16.gmra.mrb[12].mxu1 %v5045_v57 }
 0x22d   : > { %v4034_v57 = vpop.f32.mrb[20].mxu0 }
 0x22e   : > { %v1518_v55 = vpop.f32.mrb[21].mxu0 }
 0x22f   : > { %v4035_v25 = vpop.f32.mrb[22].mxu0 }
 0x230   : > { %v1521_v24 = vpop.f32.mrb[23].mxu0 }
 0x235   : > { %v4038_v3 = vpop.f32.mrb[24].mxu0 }
 0x236   : > { %v1534_v13 = vpop.f32.mrb[25].mxu0 }
 0x237   : > { %v4039_v14 = vpop.f32.mrb[26].mxu0 }
 0x238   : > { %v1537_v15 = vpop.f32.mrb[27].mxu0 }
 0x23d   : > { %v4042_v17 = vpop.f32.mrb[28].mxu0 }
 0x23e   : > { %v1550_v18 = vpop.f32.mrb[29].mxu0 }
 0x23f   : > { %v4043_v19 = vpop.f32.mrb[30].mxu0 }
 0x240   : > { %v1553_v21 = vpop.f32.mrb[31].mxu0 }
 0x245   : > { %v5263_v22 = vpop.f32.mrb[32].mxu0 }
 0x246   : > { %v5265_v8 = vpop.f32.mrb[33].mxu0 }
 0x247   : > { %v5267_v27 = vpop.f32.mrb[34].mxu0 }
 0x248   : > { %v5269_v30 = vpop.f32.mrb[35].mxu0 }
 0x293   : > { %v4226_v63 = vpop.f32.mrb[0].mxu1 }
 0x294   : > { %v4272_v33 = vadd.f32 %v4226_v63, %v4034_v57  ;;  %v2811_v34 = vpop.f32.mrb[1].mxu1 }
 0x295   : > { %v4273_v40 = vadd.f32 %v2811_v34, %v1518_v55  ;;  %v4227_v36 = vpop.f32.mrb[2].mxu1 }
 0x296   : > { %v2899_v45 = vmul.f32 %v4272_v33, %v5274_v32  ;;  %v4274_v56 = vadd.f32 %v4227_v36, %v4035_v25  ;;  %v2814_v42 = vpop.f32.mrb[3].mxu1 }
 0x297   : > { %v2897_v31 = vmul.f32 %v4273_v40, %v5274_v32  ;;  %v4275_v26 = vadd.f32 %v2814_v42, %v1521_v24 }
 0x298   : > { %v2922_v37 = vadd.f32 %v5279_v39, %v2899_v45  ;;  %v2900_v61 = vmul.f32 %v4274_v56, %v5274_v32 }
 0x299   : > { %v2920_v7 = vadd.f32 %v5279_v39, %v2897_v31  ;;  %v2898_v10 = vmul.f32 %v4275_v26, %v5274_v32 }
 0x29a   : > { %v2923_v62 = vadd.f32 %v5279_v39, %v2900_v61  ;;  %v2938_v20 = vmax.f32 %v2922_v37, 0.0 }
 0x29b   : > { %v2921_v29 = vadd.f32 %v5279_v39, %v2898_v10  ;;  %v4230_v1 = vpop.f32.mrb[4].mxu1  ;;  %v2936_v44 = vmax.f32 %v2920_v7, 0.0 }
 0x29c   : > { %v2939_v41 = vmax.f32 %v2923_v62, 0.0  ;;  %v4276_v43 = vadd.f32 %v4230_v1, %v4038_v3  ;;  %v2827_v16 = vpop.f32.mrb[5].mxu1 }
 0x29d   : > { %v2937_v38 = vmax.f32 %v2921_v29, 0.0  ;;  %v4277_v46 = vadd.f32 %v2827_v16, %v1534_v13  ;;  %v4231_v35 = vpop.f32.mrb[6].mxu1 }
 0x29e   : > { %v2953_v47 = vpack.c.bf16 %v2939_v41, %v2938_v20  ;;  %v2903_v48 = vmul.f32 %v4276_v43, %v5274_v32  ;;  %v4278_v50 = vadd.f32 %v4231_v35, %v4039_v14  ;;  %v2830_v51 = vpop.f32.mrb[7].mxu1 }
 0x29f   : > { %v2901_v52 = vmul.f32 %v4277_v46, %v5274_v32  ;;  %v4279_v53 = vadd.f32 %v2830_v51, %v1537_v15  ;;  %v2952_v58 = vpack.c.bf16 %v2937_v38, %v2936_v44 }
 0x2a0   : > { %v2926_v49 = vadd.f32 %v5279_v39, %v2903_v48  ;;  %v2904_v59 = vmul.f32 %v4278_v50, %v5274_v32  ;;  %v4558_v48 = vld [vmem:[%s4684_s30 + $0x10] sm:$0xff]  }
 0x2a1   : > { %v2924_v60 = vadd.f32 %v5279_v39, %v2901_v52  ;;  %v2902_v0 = vmul.f32 %v4279_v53, %v5274_v32  ;;  %4256 = vmatprep.mubr.bf16.mxu0 %v2952_v58  ;;  %v3145_v50 = vunpack.c.l.bf16 %v4558_v48  ;;  %v3146_v51 = vunpack.c.h.bf16 %v4558_v48 }
 0x2a2   : > { %v2927_v5 = vadd.f32 %v5279_v39, %v2904_v59  ;;  %4257 = vmatmul.mubr.bf16.vlgmr.msra.gmra.mrb[36].mxu0 %v2953_v47  ;;  %v2942_v12 = vmax.f32 %v2926_v49, 0.0 }
 0x2a3   : > { %v2925_v54 = vadd.f32 %v5279_v39, %v2902_v0  ;;  %v4234_v11 = vpop.f32.mrb[8].mxu1  ;;  %v2940_v23 = vmax.f32 %v2924_v60, 0.0  ;;  %v3179_v58 = vrot.slane %v3145_v50, 1  ;;  %v3180_v49 = vrot.slane %v3146_v51, 1 }
 0x2a4   : > { %v2943_v6 = vmax.f32 %v2927_v5, 0.0  ;;  %v4280_v4 = vadd.f32 %v4234_v11, %v4042_v17  ;;  %v2843_v9 = vpop.f32.mrb[9].mxu1  ;;  %v5327_v5 = vld [vmem:[%s5388_s10] ss:$0 sm:$0xff] }
 0x2a5   : > { %v2941_v28 = vmax.f32 %v2925_v54, 0.0  ;;  %v4281_v2 = vadd.f32 %v2843_v9, %v1550_v18  ;;  %v4235_v57 = vpop.f32.mrb[10].mxu1  ;;  %v3181_v9 = vsel %vm2335_vm1, %v3179_v58, %v3180_v49  ;;  %v4565_v49 = vld [vmem:[%s4684_s30 + $0x38] sm:$0xff]  }
 0x2a6   : > { %v2907_v55 = vmul.f32 %v4280_v4, %v5274_v32  ;;  %v4282_v25 = vadd.f32 %v4235_v57, %v4043_v19  ;;  %v2846_v24 = vpop.f32.mrb[11].mxu1  ;;  %v2955_v3 = vpack.c.bf16 %v2943_v6, %v2942_v12  ;;  %v4560_v12 = vld [vmem:[%s4684_s30 + $0x20] sm:$0xff]  }
 0x2a7   : > { %v2905_v13 = vmul.f32 %v4281_v2, %v5274_v32  ;;  %v4283_v14 = vadd.f32 %v2846_v24, %v1553_v21  ;;  %v2954_v15 = vpack.c.bf16 %v2941_v28, %v2940_v23  ;;  %v3149_v6 = vunpack.c.l.bf16 %v4560_v12  ;;  %v4561_v2 = vld [vmem:[%s4684_s30 + $0x18] sm:$0xff]  }
 0x2a8   : > { %v2930_v63 = vadd.f32 %v5279_v39, %v2907_v55  ;;  %v2908_v33 = vmul.f32 %v4282_v25, %v5274_v32  ;;  %v3150_v4 = vunpack.c.h.bf16 %v4560_v12  ;;  %v3147_v57 = vunpack.c.l.bf16 %v4561_v2 }
 0x2a9   : > { %v2928_v17 = vadd.f32 %v5279_v39, %v2905_v13  ;;  %v2906_v34 = vmul.f32 %v4283_v14, %v5274_v32  ;;  %4260 = vmatprep.mubr.bf16.mxu0 %v2954_v15  ;;  %v3148_v55 = vunpack.c.h.bf16 %v4561_v2  ;;  %v3185_v15 = vrot.slane %v3149_v6, 1 }
 0x2aa   : > { %v2931_v18 = vadd.f32 %v5279_v39, %v2908_v33  ;;  %4261 = vmatmul.mubr.bf16.gmra.mrb[40].mxu0 %v2955_v3  ;;  %v2946_v36 = vmax.f32 %v2930_v63, 0.0  ;;  %v3186_v63 = vrot.slane %v3150_v4, 1 }
 0x2ab   : > { %v2929_v19 = vadd.f32 %v5279_v39, %v2906_v34  ;;  %v4238_v40 = vpop.f32.mrb[12].mxu1  ;;  %v2944_v42 = vmax.f32 %v2928_v17, 0.0  ;;  %v3182_v17 = vrot.slane %v3147_v57, 1  ;;  %v3183_v34 = vrot.slane %v3148_v55, 1 }
 0x2ac   : > { %v2947_v45 = vmax.f32 %v2931_v18, 0.0  ;;  %v4284_v21 = vadd.f32 %v4238_v40, %v5263_v22  ;;  %v2859_v56 = vpop.f32.mrb[13].mxu1 }
 0x2ad   : > { %v2945_v31 = vmax.f32 %v2929_v19, 0.0  ;;  %v4285_v26 = vadd.f32 %v2859_v56, %v5265_v8  ;;  %v4239_v37 = vpop.f32.mrb[14].mxu1 }
 0x2ae   : > { %v2911_v61 = vmul.f32 %v4284_v21, %v5274_v32  ;;  %v4286_v7 = vadd.f32 %v4239_v37, %v5267_v27  ;;  %v2862_v10 = vpop.f32.mrb[15].mxu1  ;;  %v2957_v62 = vpack.c.bf16 %v2947_v45, %v2946_v36  ;;  %v4562_v36 = vld [vmem:[%s4684_s30 + $0x30] sm:$0xff]  }
 0x2af   : > { %v2909_v29 = vmul.f32 %v4285_v26, %v5274_v32  ;;  %v4287_v1 = vadd.f32 %v2862_v10, %v5269_v30  ;;  %v2956_v20 = vpack.c.bf16 %v2945_v31, %v2944_v42  ;;  %v3153_v45 = vunpack.c.l.bf16 %v4562_v36 }
 0x2b0   : > { %v2934_v41 = vadd.f32 %v5279_v39, %v2911_v61  ;;  %v2912_v22 = vmul.f32 %v4286_v7, %v5274_v32  ;;  %v3154_v42 = vunpack.c.h.bf16 %v4562_v36  ;;  %v3187_v26 = vsel %vm2335_vm1, %v3185_v15, %v3186_v63  ;;  %v4563_v7 = vld [vmem:[%s4684_s30 + $0x28] sm:$0xff]  }
 0x2b1   : > { %v2932_v43 = vadd.f32 %v5279_v39, %v2909_v29  ;;  %v2910_v8 = vmul.f32 %v4287_v1, %v5274_v32  ;;  %4264 = vmatprep.mubr.bf16.mxu0 %v2956_v20  ;;  %v4559_v32 = vld [vmem:[%s4684_s30 + $0x8] sm:$0xff]   ;;  %v3151_v10 = vunpack.c.l.bf16 %v4563_v7  ;;  %v3184_v1 = vsel %vm2335_vm1, %v3182_v17, %v3183_v34 }
 0x2b2   : > { %v2935_v27 = vadd.f32 %v5279_v39, %v2912_v22  ;;  %4265 = vmatmul.mubr.bf16.gmra.mrb[44].mxu0 %v2957_v62  ;;  %v2950_v44 = vmax.f32 %v2934_v41, 0.0  ;;  %v3143_v52 = vunpack.c.l.bf16 %v4559_v32  ;;  %v3144_v53 = vunpack.c.h.bf16 %v4559_v32 }
 0x2b3   : > { %v2933_v16 = vadd.f32 %v5279_v39, %v2910_v8  ;;  %v2948_v30 = vmax.f32 %v2932_v43, 0.0  ;;  %v5322_v39 = vld [vmem:[%s5387_s9] ss:$0 sm:$0xff]  ;;  %v3152_v62 = vunpack.c.h.bf16 %v4563_v7  ;;  %v3191_v43 = vrot.slane %v3153_v45, 1 }
 0x2b4   : > { %v2951_v38 = vmax.f32 %v2935_v27, 0.0  ;;  %v3176_v59 = vrot.slane %v3143_v52, 1  ;;  %v3177_v60 = vrot.slane %v3144_v53, 1  ;;  %v3192_v8 = vrot.slane %v3154_v42, 1 }
 0x2b5   : > { %v2949_v46 = vmax.f32 %v2933_v16, 0.0  ;;  %v3188_v16 = vrot.slane %v3151_v10, 1 }
 0x2b6   : > { %v2959_v35 = vpack.c.bf16 %v2951_v38, %v2950_v44  ;;  %v3178_v24 = vsel %vm2335_vm1, %v3176_v59, %v3177_v60  ;;  %v3189_v44 = vrot.slane %v3152_v62, 1  ;;  %v3193_v52 = vsel %vm2335_vm1, %v3191_v43, %v3192_v8 }
 0x2b7   : > { %v2958_v47 = vpack.c.bf16 %v2949_v46, %v2948_v30  ;;  %v3155_v59 = vunpack.c.l.bf16 %v4565_v49  ;;  %v3156_v60 = vunpack.c.h.bf16 %v4565_v49 }
 0x2b9   : > { %4268 = vmatprep.mubr.bf16.mxu0 %v2958_v47  ;;  %v3195_v2 = vrot.slane %v3156_v60, 1 }
 0x2ba   : > { %4269 = vmatmul.mubr.bf16.gmra.mrb[48].mxu0 %v2959_v35  ;;  %v4564_v35 = vld [vmem:[%s4684_s30 + $0x40] sm:$0xff]  }
 0x2bb   : > { %v3157_v47 = vunpack.c.l.bf16 %v4564_v35  ;;  %v3158_v51 = vunpack.c.h.bf16 %v4564_v35 }
 0x2bd   : > { %v3197_v4 = vrot.slane %v3157_v47, 1 }
 0x375   : > { %v4258_v0 = vpop.f32.mrb[36].mxu0 }
 0x376   : > { %v3121_v54 = vmul.f32 %v4258_v0, %v5322_v39  ;;  %v3058_v11 = vpop.f32.mrb[37].mxu0 }
 0x377   : > { %v3120_v23 = vmul.f32 %v5322_v39, %v3058_v11  ;;  %v4259_v28 = vpop.f32.mrb[38].mxu0 }
 0x378   : > { %v3136_v25 = vadd.f32 %v5327_v5, %v3121_v54  ;;  %v3061_v3 = vpop.f32.mrb[39].mxu0  ;;  %v3190_v54 = vsel %vm2335_vm1, %v3188_v16, %v3189_v44  ;;  %v3194_v28 = vrot.slane %v3155_v59, 1 }
 0x379   : > { %v3135_v13 = vadd.f32 %v5327_v5, %v3120_v23 }
 0x37a   : > { %v3209_v14 = vadd.f32 %v3181_v9, %v3136_v25  ;;  %v3198_v9 = vrot.slane %v3158_v51, 1  ;;  %v3196_v17 = vsel %vm2335_vm1, %v3194_v28, %v3195_v2 }
 0x37b   : > { %v3208_v33 = vadd.f32 %v3178_v24, %v3135_v13 }
 0x37c   : > { %v3217_v18 = vmax.f32 %v3209_v14, 0.0  ;;  %v3199_v14 = vsel %vm2335_vm1, %v3197_v4, %v3198_v9 }
 0x37d   : > { %v3216_v19 = vmax.f32 %v3208_v33, 0.0  ;;  %v4262_v40 = vpop.f32.mrb[40].mxu0 }
 0x37e   : > { %v3123_v21 = vmul.f32 %v4262_v40, %v5322_v39  ;;  %v3072_v56 = vpop.f32.mrb[41].mxu0 }
 0x37f   : > { %v3709_v31 = vpack.c.bf16 %v3217_v18, %v3216_v19  ;;  %v3122_v37 = vmul.f32 %v5322_v39, %v3072_v56  ;;  %v4263_v61 = vpop.f32.mrb[42].mxu0 }
 0x380   : > { %v3138_v29 = vadd.f32 %v5327_v5, %v3123_v21  ;;  %v3075_v20 = vpop.f32.mrb[43].mxu0 }
 0x381   : > { %3710 = vst [vmem:[%s5342_s13] sm:$0xff] %v3709_v31   ;;  %v3137_v41 = vadd.f32 %v5327_v5, %v3122_v37 }
 0x382   : > { %v3211_v22 = vadd.f32 %v3187_v26, %v3138_v29 }
 0x383   : > { %v3210_v27 = vadd.f32 %v3184_v1, %v3137_v41 }
 0x384   : > { %v3219_v38 = vmax.f32 %v3211_v22, 0.0 }
 0x385   : > { %v3218_v30 = vmax.f32 %v3210_v27, 0.0  ;;  %v4266_v46 = vpop.f32.mrb[44].mxu0 }
 0x386   : > { %v3125_v48 = vmul.f32 %v4266_v46, %v5322_v39  ;;  %v3086_v50 = vpop.f32.mrb[45].mxu0 }
 0x387   : > { %v3714_v32 = vpack.c.bf16 %v3219_v38, %v3218_v30  ;;  %v3124_v53 = vmul.f32 %v5322_v39, %v3086_v50  ;;  %v4267_v58 = vpop.f32.mrb[46].mxu0 }
 0x388   : > { %v3140_v0 = vadd.f32 %v5327_v5, %v3125_v48  ;;  %v3089_v11 = vpop.f32.mrb[47].mxu0 }
 0x389   : > { %3735 = vst [vmem:[%s5342_s13 + $0x8] sm:$0xff] %v3714_v32   ;;  %v3139_v12 = vadd.f32 %v5327_v5, %v3124_v53 }
 0x38a   : > { %v3213_v6 = vadd.f32 %v3193_v52, %v3140_v0 }
 0x38b   : > { %v3212_v23 = vadd.f32 %v3190_v54, %v3139_v12 }
 0x38c   : > { %v3221_v57 = vmax.f32 %v3213_v6, 0.0 }
 0x38d   : > { %v3220_v55 = vmax.f32 %v3212_v23, 0.0  ;;  %v4270_v25 = vpop.f32.mrb[48].mxu0 }
 0x38e   : > { %v3127_v24 = vmul.f32 %v4270_v25, %v5322_v39  ;;  %v3100_v3 = vpop.f32.mrb[49].mxu0 }
 0x38f   : > { %v3719_v13 = vpack.c.bf16 %v3221_v57, %v3220_v55  ;;  %v3126_v15 = vmul.f32 %v5322_v39, %v3100_v3  ;;  %v4271_v63 = vpop.f32.mrb[50].mxu0 }
 0x390   : > { %v3142_v33 = vadd.f32 %v5327_v5, %v3127_v24  ;;  %v3103_v34 = vpop.f32.mrb[51].mxu0 }
 0x391   : > { %3736 = vst [vmem:[%s5342_s13 + $0x10] sm:$0xff] %v3719_v13   ;;  %v3141_v18 = vadd.f32 %v5327_v5, %v3126_v15 }
 0x392   : > { %v3215_v19 = vadd.f32 %v3199_v14, %v3142_v33 }
 0x393   : > { %v3214_v40 = vadd.f32 %v3196_v17, %v3141_v18 }
 0x394   : > { %v3223_v36 = vmax.f32 %v3215_v19, 0.0 }
 0x395   : > { %v3222_v45 = vmax.f32 %v3214_v40, 0.0 }
 0x397   : > { %v3724_v21 = vpack.c.bf16 %v3223_v36, %v3222_v45 }
 0x399   : > { %3737 = vst [vmem:[%s5342_s13 + $0x18] sm:$0xff] %v3724_v21  }
 0x39a PF: > { %s21_s19 = sadd.s32 1, %s4588_s19   ;;  %s5390_s17 = smov %s4584_s18 }
 0x39b   : > { %p18_p5 = scmp.ge.s32.totalorder %s21_s19, 4   ;;  %s5391_s18 = smov %s5393_s20 }
 0x39d   :  { %20 = sbr.rel (!%p18_p5) target bundleno = 2 (0x2), region = 105 }

</bundles_post_ra>
